<compile_context>
chip_gen: v7x
topology: tpu7x:2x2x1
jax: 0.10.0
libtpu: 0.0.40
codegen_flags: <defaults>
</compile_context>

<pallas_src>
import functools

import jax
import jax.numpy as jnp
from jax.experimental import pallas as pl
from jax.experimental.pallas import tpu as pltpu

# (in_features, out_features) for each Linear layer of the Sequential.
LAYER_DIMS = [(11, 16), (16, 32), (32, 64), (64, 32), (32, 16), (16, 7)]
_N_LAYERS = len(LAYER_DIMS)
_F_IN = LAYER_DIMS[0][0]      # 11
_F_OUT = LAYER_DIMS[-1][1]    # 7
_OUT_PAD = 8                  # narrow output slab width (masked 8-lane store)
_PAD = 128                    # lane-dense width used for hidden dims / weights


def _round_up(x, m):
    return ((x + m - 1) // m) * m


def _infer_num_tensorcores():
    """Best-effort TensorCore-per-chip count (v7x = 2, v5e/v6e = 1)."""
    try:
        kind = jax.devices()[0].device_kind.lower()
    except Exception:
        return 1
    return 2 if "v7" in kind else 1


def _mlp_kernel(x_ref, w1_ref, wr_ref, b_ref, o_ref, *, precision):
    """Fused 6-layer MLP with ReLU between layers; activations stay in VMEM.

    x_ref : (tb, 11)        batch-tile of input rows (f32)
    w1_ref: (11, 128)       layer-1 weight, output dim zero-padded to 128
    wr_ref: (5, 128, 128)   layers 2..6 weights, each zero-padded to 128x128
    b_ref : (8, 128)        rows 0..5 = per-layer biases (zero-padded, f32)
    o_ref : (tb, 8)         narrow output slab; columns 0..6 are the rewards
    """
    cdt = w1_ref.dtype            # MXU input dtype (bf16 by default)
    h = x_ref[...].astype(jnp.float32)

    # Layer 1: (tb, 11) @ (11, 128).  Padded output lanes are exactly zero
    # (zero weight columns + zero bias lanes) and stay zero through every
    # later layer because the padded weight rows are zero too.
    h = jnp.dot(h.astype(cdt), w1_ref[...],
                preferred_element_type=jnp.float32, precision=precision)
    h = jnp.maximum(h + b_ref[0:1, :], 0.0)

    # Layers 2..6: uniform (tb, 128) @ (128, 128) MXU passes (unrolled).
    for l in range(_N_LAYERS - 1):
        h = jnp.dot(h.astype(cdt), wr_ref[l],
                    preferred_element_type=jnp.float32,
                    precision=precision) + b_ref[l + 1:l + 2, :]
        if l < _N_LAYERS - 2:          # no ReLU after the final Linear
            h = jnp.maximum(h, 0.0)

    # Narrow 8-lane masked store (instead of a (tb, 128) slab): the kernel is
    # HBM-writeback bound at large B, so this cuts output traffic ~16x.
    o_ref[...] = h[:, :_OUT_PAD].astype(o_ref.dtype)


def pack_params(params, *, weights_dtype=jnp.bfloat16):
    """Pack flat [w1, b1, ..., w6, b6] (weights stored as (in, out)) into
    three zero-padded, lane-dense slabs consumed by the kernel.

    weights_dtype=bf16 halves the weight DMA and uses the native bf16 MXU
    path.  Use weights_dtype=jnp.float32 plus precision=HIGHEST on the call
    for strict f32 parity tests.
    """
    w_first = jnp.zeros((_F_IN, _PAD), weights_dtype)
    w_first = w_first.at[:, :LAYER_DIMS[0][1]].set(params[0].astype(weights_dtype))

    w_rest = jnp.zeros((_N_LAYERS - 1, _PAD, _PAD), weights_dtype)
    biases = jnp.zeros((8, _PAD), jnp.float32)     # 8 rows: sublane-aligned
    biases = biases.at[0, :LAYER_DIMS[0][1]].set(
        params[1].reshape(-1).astype(jnp.float32))
    for l in range(1, _N_LAYERS):
        din, dout = LAYER_DIMS[l]
        w_rest = w_rest.at[l - 1, :din, :dout].set(params[2 * l].astype(weights_dtype))
        biases = biases.at[l, :dout].set(params[2 * l + 1].reshape(-1).astype(jnp.float32))
    return w_first, w_rest, biases


def simple_action_reward(state, packed_params, *, block_batch=1024,
                         num_tensorcores=None, precision=None):
    """state: (B, 11) float32.  packed_params: output of pack_params().

    Returns (B, 7) float32 reward logits matching the PyTorch nn.Sequential
    (bf16 matmuls with f32 accumulation by default; pack f32 weights and pass
    precision=jax.lax.Precision.HIGHEST for strict f32 parity).
    """
    w_first, w_rest, biases = packed_params
    B, F = state.shape
    assert F == _F_IN, F
    if num_tensorcores is None:
        num_tensorcores = _infer_num_tensorcores()

    gran = 8                                       # f32 sublane granule
    block_batch = max(gran, (block_batch // gran) * gran)
    tb = min(block_batch, _round_up(B, gran))
    if num_tensorcores >= 2 and B > gran:
        # Guarantee >= 2 grid steps so both TensorCores get work (the grid
        # axis is "parallel"), and prefer an even step count for balance.
        tb = min(tb, _round_up(pl.cdiv(B, 2), gran))
        steps = pl.cdiv(B, tb)
        if steps > 1 and steps % 2 == 1:
            tb = min(tb, _round_up(pl.cdiv(B, steps + 1), gran))
    grid = (pl.cdiv(B, tb),)          # ragged last block is masked by Pallas

    kernel = functools.partial(_mlp_kernel, precision=precision)

    out = pl.pallas_call(
        kernel,
        out_shape=jax.ShapeDtypeStruct((B, _OUT_PAD), jnp.float32),
        grid_spec=pltpu.PrefetchScalarGridSpec(
            num_scalar_prefetch=0,
            grid=grid,
            in_specs=[
                pl.BlockSpec((tb, _F_IN), lambda i: (i, 0)),                     # state rows
                pl.BlockSpec((_F_IN, _PAD), lambda i: (0, 0)),                   # w_first
                pl.BlockSpec((_N_LAYERS - 1, _PAD, _PAD), lambda i: (0, 0, 0)),  # w_rest
                pl.BlockSpec((8, _PAD), lambda i: (0, 0)),                       # biases
            ],
            out_specs=pl.BlockSpec((tb, _OUT_PAD), lambda i: (i, 0)),
        ),
        compiler_params=pltpu.CompilerParams(
            dimension_semantics=("parallel",)),
    )(state, w_first, w_rest, biases)

    return out[:, :_F_OUT]


def init_params(key):
    """Deterministic init matching PyTorch Linear shapes (weights transposed)."""
    params = []
    for (din, dout) in LAYER_DIMS:
        kw, kb, key = jax.random.split(key, 3)
        bound = 1.0 / (din ** 0.5)     # PyTorch default U(-1/sqrt(fan_in), ...)
        w = jax.random.uniform(kw, (din, dout), jnp.float32, -bound, bound)
        b = jax.random.uniform(kb, (dout,), jnp.float32, -bound, bound)
        params.append(w)
        params.append(b)
    return params


def reference(state, params, *, compute_dtype=jnp.float32, precision=None):
    """Pure-JAX reference; compute_dtype=bf16 mirrors the kernel's numerics."""
    h = state
    for li in range(_N_LAYERS):
        w, b = params[2 * li], params[2 * li + 1]
        h = jnp.dot(h.astype(compute_dtype), w.astype(compute_dtype),
                    preferred_element_type=jnp.float32, precision=precision) + b
        if li < _N_LAYERS - 1:
            h = jnp.maximum(h, 0.0)
    return h


if __name__ == "__main__":
    key = jax.random.PRNGKey(0)
    kx, kp = jax.random.split(key)

    batch = 200   # small; deliberately not a multiple of the tile sizes below
    state = jax.random.normal(kx, (batch, _F_IN), jnp.float32)
    params = init_params(kp)
    packed = pack_params(params)                              # bf16 weights
    ref = reference(state, params, compute_dtype=jnp.bfloat16)

    # Default path: large tile, one (or two on v7x) grid steps.
    out = jax.block_until_ready(simple_action_reward(state, packed))
    assert out.shape == (batch, _F_OUT), out.shape
    assert jnp.allclose(out, ref, atol=1e-4, rtol=1e-4), \
        float(jnp.max(jnp.abs(out - ref)))

    # Small-tile path with the 2-TensorCore tiling logic forced on:
    # 4 grid steps (even), exercises the masked ragged tail as well.
    out2 = jax.block_until_ready(
        simple_action_reward(state, packed, block_batch=64, num_tensorcores=2))
    assert out2.shape == (batch, _F_OUT), out2.shape
    assert jnp.allclose(out2, ref, atol=1e-4, rtol=1e-4), \
        float(jnp.max(jnp.abs(out2 - ref)))

    print("KERNEL_OK")
</pallas_src>

<mosaic_0001>
module attributes {stable_mosaic.version = 11 : i64} {
  func.func @_mlp_kernel(%arg0: i32, %arg1: memref<200x11xf32, #tpu.memory_space<vmem>>, %arg2: memref<11x128xbf16, #tpu.memory_space<vmem>>, %arg3: memref<5x128x128xbf16, #tpu.memory_space<vmem>>, %arg4: memref<8x128xf32, #tpu.memory_space<vmem>>, %arg5: memref<200x8xf32, #tpu.memory_space<vmem>>) attributes {dimension_semantics = [#tpu.dimension_semantics<parallel>], iteration_bounds = array<i64: 1>, scalar_prefetch = 0 : i64, scratch_operands = 0 : i64, tpu.core_type = #tpu.core_type<tc>, window_params = [{transform_indices = @transform_0, window_bounds = array<i64: 200, 11>}, {pipeline_mode = #tpu.pipeline_mode<synchronous>, transform_indices = @transform_1, window_bounds = array<i64: 11, 128>}, {pipeline_mode = #tpu.pipeline_mode<synchronous>, transform_indices = @transform_2, window_bounds = array<i64: 5, 128, 128>}, {pipeline_mode = #tpu.pipeline_mode<synchronous>, transform_indices = @transform_3, window_bounds = array<i64: 8, 128>}, {transform_indices = @transform_4, window_bounds = array<i64: 200, 8>}]} {
    %c0 = arith.constant 0 : index
    %c0_0 = arith.constant 0 : index
    %0 = vector.load %arg1[%c0, %c0_0] : memref<200x11xf32, #tpu.memory_space<vmem>>, vector<200x11xf32>
    %1 = arith.truncf %0 : vector<200x11xf32> to vector<200x11xbf16>
    %c0_1 = arith.constant 0 : index
    %c0_2 = arith.constant 0 : index
    %2 = vector.load %arg2[%c0_1, %c0_2] : memref<11x128xbf16, #tpu.memory_space<vmem>>, vector<11x128xbf16>
    %cst = arith.constant dense<0.000000e+00> : vector<200x128xf32>
    %3 = tpu.matmul %1, %2, %cst {dimension_numbers = #tpu.dot_dimension_numbers<[1], [0], [0], [1], [0, 0, 1, 1], [], []>} : vector<200x11xbf16>, vector<11x128xbf16>, vector<200x128xf32> -> vector<200x128xf32>
    %c0_3 = arith.constant 0 : index
    %c0_4 = arith.constant 0 : index
    %4 = vector.load %arg4[%c0_3, %c0_4] : memref<8x128xf32, #tpu.memory_space<vmem>>, vector<1x128xf32>
    %5 = vector.broadcast %4 : vector<1x128xf32> to vector<200x128xf32>
    %6 = arith.addf %3, %5 : vector<200x128xf32>
    %cst_5 = arith.constant 0.000000e+00 : f32
    %7 = vector.broadcast %cst_5 : f32 to vector<200x128xf32>
    %8 = arith.maximumf %6, %7 : vector<200x128xf32>
    %9 = arith.truncf %8 : vector<200x128xf32> to vector<200x128xbf16>
    %c0_6 = arith.constant 0 : index
    %c0_7 = arith.constant 0 : index
    %c0_8 = arith.constant 0 : index
    %10 = vector.load %arg3[%c0_6, %c0_7, %c0_8] : memref<5x128x128xbf16, #tpu.memory_space<vmem>>, vector<1x128x128xbf16>
    %11 = vector.shape_cast %10 : vector<1x128x128xbf16> to vector<128x128xbf16>
    %cst_9 = arith.constant dense<0.000000e+00> : vector<200x128xf32>
    %12 = tpu.matmul %9, %11, %cst_9 {dimension_numbers = #tpu.dot_dimension_numbers<[1], [0], [0], [1], [0, 0, 1, 1], [], []>} : vector<200x128xbf16>, vector<128x128xbf16>, vector<200x128xf32> -> vector<200x128xf32>
    %c1 = arith.constant 1 : index
    %c0_10 = arith.constant 0 : index
    %13 = vector.load %arg4[%c1, %c0_10] : memref<8x128xf32, #tpu.memory_space<vmem>>, vector<1x128xf32>
    %14 = vector.broadcast %13 : vector<1x128xf32> to vector<200x128xf32>
    %15 = arith.addf %12, %14 : vector<200x128xf32>
    %cst_11 = arith.constant 0.000000e+00 : f32
    %16 = vector.broadcast %cst_11 : f32 to vector<200x128xf32>
    %17 = arith.maximumf %15, %16 : vector<200x128xf32>
    %18 = arith.truncf %17 : vector<200x128xf32> to vector<200x128xbf16>
    %c1_12 = arith.constant 1 : index
    %c0_13 = arith.constant 0 : index
    %c0_14 = arith.constant 0 : index
    %19 = vector.load %arg3[%c1_12, %c0_13, %c0_14] : memref<5x128x128xbf16, #tpu.memory_space<vmem>>, vector<1x128x128xbf16>
    %20 = vector.shape_cast %19 : vector<1x128x128xbf16> to vector<128x128xbf16>
    %cst_15 = arith.constant dense<0.000000e+00> : vector<200x128xf32>
    %21 = tpu.matmul %18, %20, %cst_15 {dimension_numbers = #tpu.dot_dimension_numbers<[1], [0], [0], [1], [0, 0, 1, 1], [], []>} : vector<200x128xbf16>, vector<128x128xbf16>, vector<200x128xf32> -> vector<200x128xf32>
    %c2 = arith.constant 2 : index
    %c0_16 = arith.constant 0 : index
    %22 = vector.load %arg4[%c2, %c0_16] : memref<8x128xf32, #tpu.memory_space<vmem>>, vector<1x128xf32>
    %23 = vector.broadcast %22 : vector<1x128xf32> to vector<200x128xf32>
    %24 = arith.addf %21, %23 : vector<200x128xf32>
    %cst_17 = arith.constant 0.000000e+00 : f32
    %25 = vector.broadcast %cst_17 : f32 to vector<200x128xf32>
    %26 = arith.maximumf %24, %25 : vector<200x128xf32>
    %27 = arith.truncf %26 : vector<200x128xf32> to vector<200x128xbf16>
    %c2_18 = arith.constant 2 : index
    %c0_19 = arith.constant 0 : index
    %c0_20 = arith.constant 0 : index
    %28 = vector.load %arg3[%c2_18, %c0_19, %c0_20] : memref<5x128x128xbf16, #tpu.memory_space<vmem>>, vector<1x128x128xbf16>
    %29 = vector.shape_cast %28 : vector<1x128x128xbf16> to vector<128x128xbf16>
    %cst_21 = arith.constant dense<0.000000e+00> : vector<200x128xf32>
    %30 = tpu.matmul %27, %29, %cst_21 {dimension_numbers = #tpu.dot_dimension_numbers<[1], [0], [0], [1], [0, 0, 1, 1], [], []>} : vector<200x128xbf16>, vector<128x128xbf16>, vector<200x128xf32> -> vector<200x128xf32>
    %c3 = arith.constant 3 : index
    %c0_22 = arith.constant 0 : index
    %31 = vector.load %arg4[%c3, %c0_22] : memref<8x128xf32, #tpu.memory_space<vmem>>, vector<1x128xf32>
    %32 = vector.broadcast %31 : vector<1x128xf32> to vector<200x128xf32>
    %33 = arith.addf %30, %32 : vector<200x128xf32>
    %cst_23 = arith.constant 0.000000e+00 : f32
    %34 = vector.broadcast %cst_23 : f32 to vector<200x128xf32>
    %35 = arith.maximumf %33, %34 : vector<200x128xf32>
    %36 = arith.truncf %35 : vector<200x128xf32> to vector<200x128xbf16>
    %c3_24 = arith.constant 3 : index
    %c0_25 = arith.constant 0 : index
    %c0_26 = arith.constant 0 : index
    %37 = vector.load %arg3[%c3_24, %c0_25, %c0_26] : memref<5x128x128xbf16, #tpu.memory_space<vmem>>, vector<1x128x128xbf16>
    %38 = vector.shape_cast %37 : vector<1x128x128xbf16> to vector<128x128xbf16>
    %cst_27 = arith.constant dense<0.000000e+00> : vector<200x128xf32>
    %39 = tpu.matmul %36, %38, %cst_27 {dimension_numbers = #tpu.dot_dimension_numbers<[1], [0], [0], [1], [0, 0, 1, 1], [], []>} : vector<200x128xbf16>, vector<128x128xbf16>, vector<200x128xf32> -> vector<200x128xf32>
    %c4 = arith.constant 4 : index
    %c0_28 = arith.constant 0 : index
    %40 = vector.load %arg4[%c4, %c0_28] : memref<8x128xf32, #tpu.memory_space<vmem>>, vector<1x128xf32>
    %41 = vector.broadcast %40 : vector<1x128xf32> to vector<200x128xf32>
    %42 = arith.addf %39, %41 : vector<200x128xf32>
    %cst_29 = arith.constant 0.000000e+00 : f32
    %43 = vector.broadcast %cst_29 : f32 to vector<200x128xf32>
    %44 = arith.maximumf %42, %43 : vector<200x128xf32>
    %45 = arith.truncf %44 : vector<200x128xf32> to vector<200x128xbf16>
    %c4_30 = arith.constant 4 : index
    %c0_31 = arith.constant 0 : index
    %c0_32 = arith.constant 0 : index
    %46 = vector.load %arg3[%c4_30, %c0_31, %c0_32] : memref<5x128x128xbf16, #tpu.memory_space<vmem>>, vector<1x128x128xbf16>
    %47 = vector.shape_cast %46 : vector<1x128x128xbf16> to vector<128x128xbf16>
    %cst_33 = arith.constant dense<0.000000e+00> : vector<200x128xf32>
    %48 = tpu.matmul %45, %47, %cst_33 {dimension_numbers = #tpu.dot_dimension_numbers<[1], [0], [0], [1], [0, 0, 1, 1], [], []>} : vector<200x128xbf16>, vector<128x128xbf16>, vector<200x128xf32> -> vector<200x128xf32>
    %c5 = arith.constant 5 : index
    %c0_34 = arith.constant 0 : index
    %49 = vector.load %arg4[%c5, %c0_34] : memref<8x128xf32, #tpu.memory_space<vmem>>, vector<1x128xf32>
    %50 = vector.broadcast %49 : vector<1x128xf32> to vector<200x128xf32>
    %51 = arith.addf %48, %50 : vector<200x128xf32>
    %52 = vector.extract_strided_slice %51 {offsets = [0, 0], sizes = [200, 8], strides = [1, 1]} : vector<200x128xf32> to vector<200x8xf32>
    %c0_35 = arith.constant 0 : index
    %c0_36 = arith.constant 0 : index
    %53 = vector.load %arg5[%c0_35, %c0_36] : memref<200x8xf32, #tpu.memory_space<vmem>>, vector<200x8xf32>
    tpu.vector_store %arg5[%c0_35, %c0_36], %52 {strides = array<i32>} : memref<200x8xf32, #tpu.memory_space<vmem>>, vector<200x8xf32>,
    return
  }
  func.func @transform_0(%arg0: i32) -> (i32, i32) {
    %c0_i32 = arith.constant 0 : i32
    %c0_i32_0 = arith.constant 0 : i32
    return %arg0, %c0_i32 : i32, i32
  }
  func.func @transform_1(%arg0: i32) -> (i32, i32) {
    %c0_i32 = arith.constant 0 : i32
    %c0_i32_0 = arith.constant 0 : i32
    %c0_i32_1 = arith.constant 0 : i32
    return %c0_i32, %c0_i32_0 : i32, i32
  }
  func.func @transform_2(%arg0: i32) -> (i32, i32, i32) {
    %c0_i32 = arith.constant 0 : i32
    %c0_i32_0 = arith.constant 0 : i32
    %c0_i32_1 = arith.constant 0 : i32
    %c0_i32_2 = arith.constant 0 : i32
    return %c0_i32, %c0_i32_0, %c0_i32_1 : i32, i32, i32
  }
  func.func @transform_3(%arg0: i32) -> (i32, i32) {
    %c0_i32 = arith.constant 0 : i32
    %c0_i32_0 = arith.constant 0 : i32
    %c0_i32_1 = arith.constant 0 : i32
    return %c0_i32, %c0_i32_0 : i32, i32
  }
  func.func @transform_4(%arg0: i32) -> (i32, i32) {
    %c0_i32 = arith.constant 0 : i32
    %c0_i32_0 = arith.constant 0 : i32
    return %arg0, %c0_i32 : i32, i32
  }
}

</mosaic_0001>

<bundles_post_ra>
// kernel: tpu_custom_call.1
= control target key start
LH: loop header
LB: loop body
LE: loop exit
PB: predicated region body
PF: predicated region fallthrough
CT: control target
= control target key end

     0   :  { %9 = vsyncpa [#allocation3], 0  ;;  %s2175_s15 = smov [#allocation2]   ;;  %s2794_s0 = inlined_call_operand.vmem [shape: f32[200,11], index: 0, kind: input, shape index: {}]   ;;  %s2795_s1 = inlined_call_operand.vmem [shape: bf16[11,128], index: 1, kind: input, shape index: {}]   ;;  %s2796_s2 = inlined_call_operand.hbm [shape: bf16[5,128,128], index: 2, kind: input, shape index: {}]   ;;  %s2797_s3 = inlined_call_operand.vmem [shape: f32[8,128], index: 3, kind: input, shape index: {}]   ;;  %s2798_s4 = inlined_call_operand.vmem [shape: f32[200,8], index: 4, kind: output, shape index: {}]  }
   0x1   :  { %s19_s16 = sshll.u32 %s2175_s15, 4  ;;  %s2151_s19 = scalar_lea.hbm %s2796_s2, 5120  ;;  %s20_s16 = int_to_ptr.vmem [resolvable:$true] %s19_s16 }
   0x2   :  { %p2152_p0 = scmp.ne.s32.totalorder %s2796_s2, %s2151_s19  ;;  %p2155_p1 = scmp.lt.u32.totalorder %s2151_s19, %s2796_s2 }
   0x4   :  { %p2157_p2 = pnand %p2155_p1, %p2152_p0 }
   0x6   :  { %2160 = shalt.err (!%p2157_p2)
}
   0x7   :  { %s2161_s24 = scalar_lea.vmem %s20_s16, 5120  ;;  %p2166_p4 = scmp.lt.s32.totalorder %s20_s16, %s20_s16 }
   0x8   :  { %p2162_p3 = scmp.ne.s32.totalorder %s20_s16, %s2161_s24  ;;  %p2167_p5 = scmp.lt.s32.totalorder %s2161_s24, %s2161_s24 }
   0xa   :  { %p2168_p6 = por %p2167_p5, %p2166_p4 }
   0xc   :  { %p2169_p7 = pnand %p2168_p6, %p2162_p3 }
   0xe   :  { %2172 = shalt.err (!%p2169_p7)
}
   0xf   :  { %s2176_s25 = smov 64   ;;  %s2177_s26 = smov 4  }
  0x10   :  { %25 = dma.hbm_to_vmem [thread:$0]  %s2796_s2, 5120, %s20_s16, [#allocation3], %s2176_s25, %s2176_s25, %s2177_s26  }
  0x11   :  { %2173 = dma.done.wait [#allocation3], 5120  }
  0x12   :  { %2174 = vsyncadd [#allocation3], 4294962176  ;;  %vm122_vm0 = vcmask 1044480   ;;  %v2178_v0 = vmov 0.0   ;;  %vm2179_vm1 = vmmov 0   ;;  %vm123_vm2 = vcmask 1045504  }
  0x13   :  { %1694 = vmatprep.subr.bf16.mxu0 %v2178_v0  ;;  %1748 = vmatprep.subr.bf16.mxu1 %v2178_v0  ;;  %v2180_v1 = vmov 65535   ;;  %v2110_v4 = vld [vmem:[%s2795_s1] sm:$0x3f]   ;;  %v33_v6 = vld [vmem:[%s2794_s0 + $0x8] sm:$0xff]  ;;  %vm82_vm3 = vcmask 89088   ;;  %v34_v9 = vld [vmem:[%s2794_s0 + $0x10] sm:$0xff] }
  0x14   :  { %1696 = vmatprep.mubr.msk.bf16.mxu0 %vm2179_vm1, %v2178_v0  ;;  %1764 = vmatprep.mubr.msk.bf16.mxu1 %vm2179_vm1, %v2178_v0  ;;  %v124_v2 = vsel %vm122_vm0, 4294967295, %v2180_v1  ;;  %v32_v5 = vld [vmem:[%s2794_s0] sm:$0xff]  ;;  %v35_v10 = vld [vmem:[%s2794_s0 + $0x18] sm:$0xff]  ;;  %v2112_v13 = vld [vmem:[#allocation2 + $0x8] sm:$0xff]   ;;  %vm1484_vm4 = vcmask 64512  }
  0x15   :  { %v125_v3 = vsel %vm123_vm2, %v124_v2, 0  ;;  %v57_v8 = vpack.c.bf16 %v33_v6, %v32_v5  ;;  %v2111_v11 = vld [vmem:[#allocation2] sm:$0xff]   ;;  %v58_v12 = vpack.c.bf16 %v35_v10, %v34_v9  ;;  %v37_v15 = vld [vmem:[%s2794_s0 + $0x28] sm:$0xff]  ;;  %v2113_v16 = vld [vmem:[#allocation2 + $0x10] sm:$0xff]  }
  0x16   :  { %v127_v7 = vand.u32 %v2110_v4, %v125_v3  ;;  %1749 = vmatpush3.bf16.msra.mxu1 %v2111_v11  ;;  %v36_v14 = vld [vmem:[%s2794_s0 + $0x20] sm:$0xff]  ;;  %v2114_v17 = vld [vmem:[#allocation2 + $0x18] sm:$0xff]   ;;  %v38_v19 = vld [vmem:[%s2794_s0 + $0x30] sm:$0xff] }
  0x17   :  { %1750 = vmatprep.subr.bf16.mxu1 %v2178_v0  ;;  %v59_v18 = vpack.c.bf16 %v37_v15, %v36_v14  ;;  %v39_v20 = vld [vmem:[%s2794_s0 + $0x38] sm:$0xff]  ;;  %v2115_v21 = vld [vmem:[#allocation2 + $0x20] sm:$0xff]   ;;  %v2116_v22 = vld [vmem:[#allocation2 + $0x28] sm:$0xff]  }
  0x18   :  { %1695 = vmatpush3.bf16.msra.mxu0 %v127_v7  ;;  %v60_v23 = vpack.c.bf16 %v39_v20, %v38_v19  ;;  %v40_v24 = vld [vmem:[%s2794_s0 + $0x40] sm:$0xff]  ;;  %v41_v25 = vld [vmem:[%s2794_s0 + $0x48] sm:$0xff]  ;;  %v42_v27 = vld [vmem:[%s2794_s0 + $0x50] sm:$0xff] }
  0x19   :  { %1816 = vmatprep.subr.bf16.mxu0 %v2178_v0  ;;  %v61_v26 = vpack.c.bf16 %v41_v25, %v40_v24  ;;  %v43_v28 = vld [vmem:[%s2794_s0 + $0x58] sm:$0xff]  ;;  %v44_v30 = vld [vmem:[%s2794_s0 + $0x60] sm:$0xff]  ;;  %v45_v31 = vld [vmem:[%s2794_s0 + $0x68] sm:$0xff] }
  0x1a   :  { %1751 = vmatpush3.bf16.msra.mxu1 %v2112_v13  ;;  %v62_v29 = vpack.c.bf16 %v43_v28, %v42_v27  ;;  %v63_v32 = vpack.c.bf16 %v45_v31, %v44_v30  ;;  %v46_v33 = vld [vmem:[%s2794_s0 + $0x70] sm:$0xff]  ;;  %v47_v34 = vld [vmem:[%s2794_s0 + $0x78] sm:$0xff]  ;;  %v48_v36 = vld [vmem:[%s2794_s0 + $0x80] sm:$0xff] }
  0x1b   :  { %1697 = vmatmul.mubr.msk.bf16.vlgmr.msra.gmra.mrb[0].mxu0 %vm82_vm3, %v57_v8  ;;  %1752 = vmatprep.subr.bf16.mxu1 %v2178_v0  ;;  %v64_v35 = vpack.c.bf16 %v47_v34, %v46_v33  ;;  %v49_v37 = vld [vmem:[%s2794_s0 + $0x88] sm:$0xff]  ;;  %v50_v39 = vld [vmem:[%s2794_s0 + $0x90] sm:$0xff]  ;;  %v51_v40 = vld [vmem:[%s2794_s0 + $0x98] sm:$0xff] }
  0x1c   :  { %1700 = vmatprep.mubr.msk.bf16.mxu0 %vm2179_vm1, %v2178_v0  ;;  %v65_v38 = vpack.c.bf16 %v49_v37, %v48_v36  ;;  %v66_v41 = vpack.c.bf16 %v51_v40, %v50_v39  ;;  %v52_v42 = vld [vmem:[%s2794_s0 + $0xa0] sm:$0xff]  ;;  %v53_v43 = vld [vmem:[%s2794_s0 + $0xa8] sm:$0xff]  ;;  %v54_v45 = vld [vmem:[%s2794_s0 + $0xb0] sm:$0xff] }
  0x1d   :  { %v67_v44 = vpack.c.bf16 %v53_v43, %v52_v42  ;;  %v55_v46 = vld [vmem:[%s2794_s0 + $0xb8] sm:$0xff]  ;;  %v2117_v47 = vld [vmem:[#allocation2 + $0x30] sm:$0xff]   ;;  %v56_v50 = vld [vmem:[%s2794_s0 + $0xc0] sm:$0xff] }
  0x1e   :  { %1753 = vmatpush3.bf16.msra.mxu1 %v2113_v16  ;;  %v68_v48 = vpack.c.bf16 %v55_v46, %v54_v45  ;;  %v2118_v49 = vld [vmem:[#allocation2 + $0x38] sm:$0xff]   ;;  %v69_v51 = vpack.c.bf16 %v56_v50, %v56_v50  ;;  %v2119_v52 = vld [vmem:[#allocation2 + $0x40] sm:$0xff]   ;;  %v2120_v53 = vld [vmem:[#allocation2 + $0x48] sm:$0xff]  }
  0x1f   :  { %1754 = vmatprep.subr.bf16.mxu1 %v2178_v0  ;;  %1817 = vmatpush3.bf16.msra.mxu0 %v2119_v52  ;;  %v2121_v54 = vld [vmem:[#allocation2 + $0x50] sm:$0xff]   ;;  %v2122_v55 = vld [vmem:[#allocation2 + $0x58] sm:$0xff]   ;;  %v2123_v56 = vld [vmem:[#allocation2 + $0x60] sm:$0xff]  }
  0x20   :  { %1818 = vmatprep.subr.bf16.mxu0 %v2178_v0  ;;  %v2124_v57 = vld [vmem:[#allocation2 + $0x68] sm:$0xff]   ;;  %v2358_v58 = vld [vmem:[%s2797_s3] ss:$0 sm:$0xff]  ;;  %v2125_v59 = vld [vmem:[#allocation2 + $0x70] sm:$0xff]  }
  0x21   :  { %v2126_v3 = vld [vmem:[#allocation2 + $0x78] sm:$0xff]  }
  0x22   :  { %1755 = vmatpush3.bf16.msra.mxu1 %v2114_v17 }
  0x23   :  { %1701 = vmatmul.mubr.msk.bf16.gmra.mrb[4].mxu0 %vm82_vm3, %v58_v12  ;;  %1756 = vmatprep.subr.bf16.mxu1 %v2178_v0 }
  0x24   :  { %1704 = vmatprep.mubr.msk.bf16.mxu0 %vm2179_vm1, %v2178_v0  ;;  %1819 = vmatpush3.bf16.msra.mxu0 %v2120_v53 }
  0x25   :  { %1820 = vmatprep.subr.bf16.mxu0 %v2178_v0 }
  0x26   :  { %1757 = vmatpush3.bf16.msra.mxu1 %v2115_v21 }
  0x27   :  { %1758 = vmatprep.subr.bf16.mxu1 %v2178_v0 }
  0x28   :  { %1821 = vmatpush3.bf16.msra.mxu0 %v2121_v54 }
  0x29   :  { %1822 = vmatprep.subr.bf16.mxu0 %v2178_v0 }
  0x2a   :  { %1759 = vmatpush3.bf16.msra.mxu1 %v2116_v22 }
  0x2b   :  { %1705 = vmatmul.mubr.msk.bf16.gmra.mrb[8].mxu0 %vm82_vm3, %v59_v18  ;;  %1760 = vmatprep.subr.bf16.mxu1 %v2178_v0 }
  0x2c   :  { %1708 = vmatprep.mubr.msk.bf16.mxu0 %vm2179_vm1, %v2178_v0  ;;  %1823 = vmatpush3.bf16.msra.mxu0 %v2122_v55 }
  0x2d   :  { %1824 = vmatprep.subr.bf16.mxu0 %v2178_v0 }
  0x2e   :  { %1761 = vmatpush3.bf16.msra.mxu1 %v2117_v47 }
  0x2f   :  { %1762 = vmatprep.subr.bf16.mxu1 %v2178_v0 }
  0x30   :  { %1825 = vmatpush3.bf16.msra.mxu0 %v2123_v56 }
  0x31   :  { %1826 = vmatprep.subr.bf16.mxu0 %v2178_v0 }
  0x32   :  { %1763 = vmatpush3.bf16.msra.mxu1 %v2118_v49 }
  0x33   :  { %1709 = vmatmul.mubr.msk.bf16.gmra.mrb[12].mxu0 %vm82_vm3, %v60_v23  ;;  %1884 = vmatprep.subr.bf16.mxu1 %v2178_v0 }
  0x34   :  { %1712 = vmatprep.mubr.msk.bf16.mxu0 %vm2179_vm1, %v2178_v0  ;;  %1827 = vmatpush3.bf16.msra.mxu0 %v2124_v57 }
  0x35   :  { %1828 = vmatprep.subr.bf16.mxu0 %v2178_v0 }
  0x38   :  { %1829 = vmatpush3.bf16.msra.mxu0 %v2125_v59 }
  0x39   :  { %1830 = vmatprep.subr.bf16.mxu0 %v2178_v0 }
  0x3b   :  { %1713 = vmatmul.mubr.msk.bf16.gmra.mrb[16].mxu0 %vm82_vm3, %v61_v26 }
  0x3c   :  { %1716 = vmatprep.mubr.msk.bf16.mxu0 %vm2179_vm1, %v2178_v0  ;;  %1831 = vmatpush3.bf16.msra.mxu0 %v2126_v3 }
  0x3d   :  { %1952 = vmatprep.subr.bf16.mxu0 %v2178_v0 }
  0x43   :  { %1717 = vmatmul.mubr.msk.bf16.gmra.mrb[20].mxu0 %vm82_vm3, %v62_v29 }
  0x44   :  { %1720 = vmatprep.mubr.msk.bf16.mxu0 %vm2179_vm1, %v2178_v0 }
  0x4b   :  { %1721 = vmatmul.mubr.msk.bf16.gmra.mrb[24].mxu0 %vm82_vm3, %v63_v32 }
  0x4c   :  { %1724 = vmatprep.mubr.msk.bf16.mxu0 %vm2179_vm1, %v2178_v0 }
  0x53   :  { %1725 = vmatmul.mubr.msk.bf16.gmra.mrb[28].mxu0 %vm82_vm3, %v64_v35 }
  0x54   :  { %1728 = vmatprep.mubr.msk.bf16.mxu0 %vm2179_vm1, %v2178_v0 }
  0x5b   :  { %1729 = vmatmul.mubr.msk.bf16.gmra.mrb[32].mxu0 %vm82_vm3, %v65_v38 }
  0x5c   :  { %1732 = vmatprep.mubr.msk.bf16.mxu0 %vm2179_vm1, %v2178_v0 }
  0x63   :  { %1733 = vmatmul.mubr.msk.bf16.gmra.mrb[36].mxu0 %vm82_vm3, %v66_v41 }
  0x64   :  { %1736 = vmatprep.mubr.msk.bf16.mxu0 %vm2179_vm1, %v2178_v0 }
  0x6b   :  { %1737 = vmatmul.mubr.msk.bf16.gmra.mrb[40].mxu0 %vm82_vm3, %v67_v44 }
  0x6c   :  { %1740 = vmatprep.mubr.msk.bf16.mxu0 %vm2179_vm1, %v2178_v0 }
  0x73   :  { %1741 = vmatmul.mubr.msk.bf16.gmra.mrb[44].mxu0 %vm82_vm3, %v68_v48 }
  0x74   :  { %1744 = vmatprep.mubr.msk.bf16.mxu0 %vm2179_vm1, %v2178_v0 }
  0x7b   :  { %1745 = vmatmul.mubr.msk.bf16.gmra.mrb[48].mxu0 %vm82_vm3, %v69_v51 }
  0x7c   :  { %1832 = vmatprep.mubr.msk.bf16.mxu0 %vm2179_vm1, %v2178_v0 }
  0xee   :  { %v163_v60 = vpop.f32.mrb[0].mxu0 }
  0xef   :  { %v164_v61 = vadd.f32 %v2358_v58, %v163_v60  ;;  %v1698_v62 = vpop.f32.mrb[1].mxu0 }
  0xf0   :  { %v166_v63 = vpop.f32.mrb[2].mxu0 }
  0xf1   :  { %v167_v1 = vadd.f32 %v2358_v58, %v166_v63  ;;  %v1699_v2 = vpop.f32.mrb[3].mxu0  ;;  %v265_v4 = vmax.f32 %v164_v61, 0.0 }
  0xf3   :  { %v266_v5 = vmax.f32 %v167_v1, 0.0 }
  0xf5   :  { %v290_v6 = vpack.c.bf16 %v266_v5, %v265_v4 }
  0xf6   :  { %v171_v7 = vpop.f32.mrb[4].mxu0 }
  0xf7   :  { %v172_v8 = vadd.f32 %v2358_v58, %v171_v7  ;;  %v1702_v9 = vpop.f32.mrb[5].mxu0  ;;  %1765 = vmatmul.mubr.bf16.vlgmr.msra.gmra.mrb[0].mxu1 %v290_v6 }
  0xf8   :  { %v174_v10 = vpop.f32.mrb[6].mxu0  ;;  %1768 = vmatprep.mubr.msk.bf16.mxu1 %vm2179_vm1, %v2178_v0 }
  0xf9   :  { %v175_v11 = vadd.f32 %v2358_v58, %v174_v10  ;;  %v1703_v12 = vpop.f32.mrb[7].mxu0  ;;  %v267_v13 = vmax.f32 %v172_v8, 0.0 }
  0xfb   :  { %v268_v14 = vmax.f32 %v175_v11, 0.0 }
  0xfd   :  { %v291_v15 = vpack.c.bf16 %v268_v14, %v267_v13 }
  0xfe   :  { %v179_v16 = vpop.f32.mrb[8].mxu0 }
  0xff   :  { %v180_v17 = vadd.f32 %v2358_v58, %v179_v16  ;;  %v1706_v18 = vpop.f32.mrb[9].mxu0  ;;  %1769 = vmatmul.mubr.bf16.gmra.mrb[4].mxu1 %v291_v15 }
 0x100   :  { %v182_v19 = vpop.f32.mrb[10].mxu0  ;;  %1772 = vmatprep.mubr.msk.bf16.mxu1 %vm2179_vm1, %v2178_v0 }
 0x101   :  { %v183_v20 = vadd.f32 %v2358_v58, %v182_v19  ;;  %v1707_v21 = vpop.f32.mrb[11].mxu0  ;;  %v269_v22 = vmax.f32 %v180_v17, 0.0 }
 0x103   :  { %v270_v23 = vmax.f32 %v183_v20, 0.0 }
 0x105   :  { %v292_v24 = vpack.c.bf16 %v270_v23, %v269_v22 }
 0x106   :  { %v187_v25 = vpop.f32.mrb[12].mxu0 }
 0x107   :  { %v188_v26 = vadd.f32 %v2358_v58, %v187_v25  ;;  %v1710_v27 = vpop.f32.mrb[13].mxu0  ;;  %1773 = vmatmul.mubr.bf16.gmra.mrb[8].mxu1 %v292_v24 }
 0x108   :  { %v190_v28 = vpop.f32.mrb[14].mxu0  ;;  %1776 = vmatprep.mubr.msk.bf16.mxu1 %vm2179_vm1, %v2178_v0 }
 0x109   :  { %v191_v29 = vadd.f32 %v2358_v58, %v190_v28  ;;  %v1711_v30 = vpop.f32.mrb[15].mxu0  ;;  %v271_v31 = vmax.f32 %v188_v26, 0.0 }
 0x10b   :  { %v272_v32 = vmax.f32 %v191_v29, 0.0 }
 0x10d   :  { %v293_v33 = vpack.c.bf16 %v272_v32, %v271_v31 }
 0x10e   :  { %v195_v34 = vpop.f32.mrb[16].mxu0 }
 0x10f   :  { %v196_v35 = vadd.f32 %v2358_v58, %v195_v34  ;;  %v1714_v36 = vpop.f32.mrb[17].mxu0  ;;  %1777 = vmatmul.mubr.bf16.gmra.mrb[12].mxu1 %v293_v33 }
 0x110   :  { %v198_v37 = vpop.f32.mrb[18].mxu0  ;;  %1780 = vmatprep.mubr.msk.bf16.mxu1 %vm2179_vm1, %v2178_v0 }
 0x111   :  { %v199_v38 = vadd.f32 %v2358_v58, %v198_v37  ;;  %v1715_v39 = vpop.f32.mrb[19].mxu0  ;;  %v273_v40 = vmax.f32 %v196_v35, 0.0 }
 0x113   :  { %v274_v41 = vmax.f32 %v199_v38, 0.0 }
 0x115   :  { %v294_v42 = vpack.c.bf16 %v274_v41, %v273_v40 }
 0x116   :  { %v203_v43 = vpop.f32.mrb[20].mxu0 }
 0x117   :  { %v204_v44 = vadd.f32 %v2358_v58, %v203_v43  ;;  %v1718_v45 = vpop.f32.mrb[21].mxu0  ;;  %1781 = vmatmul.mubr.bf16.gmra.mrb[16].mxu1 %v294_v42 }
 0x118   :  { %v206_v46 = vpop.f32.mrb[22].mxu0  ;;  %1784 = vmatprep.mubr.msk.bf16.mxu1 %vm2179_vm1, %v2178_v0 }
 0x119   :  { %v207_v47 = vadd.f32 %v2358_v58, %v206_v46  ;;  %v1719_v48 = vpop.f32.mrb[23].mxu0  ;;  %v275_v49 = vmax.f32 %v204_v44, 0.0 }
 0x11b   :  { %v276_v50 = vmax.f32 %v207_v47, 0.0 }
 0x11d   :  { %v295_v51 = vpack.c.bf16 %v276_v50, %v275_v49 }
 0x11e   :  { %v211_v52 = vpop.f32.mrb[24].mxu0 }
 0x11f   :  { %v212_v53 = vadd.f32 %v2358_v58, %v211_v52  ;;  %v1722_v54 = vpop.f32.mrb[25].mxu0  ;;  %1785 = vmatmul.mubr.bf16.gmra.mrb[20].mxu1 %v295_v51  ;;  %v2127_v51 = vld [vmem:[#allocation2 + $0x80] sm:$0xff]   ;;  %v2128_v52 = vld [vmem:[#allocation2 + $0x88] sm:$0xff]  }
 0x120   :  { %v214_v55 = vpop.f32.mrb[26].mxu0  ;;  %1788 = vmatprep.mubr.msk.bf16.mxu1 %vm2179_vm1, %v2178_v0  ;;  %1885 = vmatpush3.bf16.msra.mxu1 %v2127_v51  ;;  %v2131_v54 = vld [vmem:[#allocation2 + $0xa0] sm:$0xff]  }
 0x121   :  { %v215_v56 = vadd.f32 %v2358_v58, %v214_v55  ;;  %v1723_v57 = vpop.f32.mrb[27].mxu0  ;;  %v277_v59 = vmax.f32 %v212_v53, 0.0  ;;  %1886 = vmatprep.subr.bf16.mxu1 %v2178_v0  ;;  %v2129_v53 = vld [vmem:[#allocation2 + $0x90] sm:$0xff]   ;;  %v2132_v55 = vld [vmem:[#allocation2 + $0xa8] sm:$0xff]  }
 0x122   :  { %v2133_v57 = vld [vmem:[#allocation2 + $0xb0] sm:$0xff]  }
 0x123   :  { %v278_v60 = vmax.f32 %v215_v56, 0.0  ;;  %v2422_v56 = vld [vmem:[%s2797_s3 + $0x1] ss:$0 sm:$0xff] }
 0x124   :  { %1887 = vmatpush3.bf16.msra.mxu1 %v2128_v52 }
 0x125   :  { %v296_v61 = vpack.c.bf16 %v278_v60, %v277_v59  ;;  %1888 = vmatprep.subr.bf16.mxu1 %v2178_v0 }
 0x126   :  { %v219_v62 = vpop.f32.mrb[28].mxu0 }
 0x127   :  { %v220_v63 = vadd.f32 %v2358_v58, %v219_v62  ;;  %v1726_v1 = vpop.f32.mrb[29].mxu0  ;;  %1789 = vmatmul.mubr.bf16.gmra.mrb[24].mxu1 %v296_v61 }
 0x128   :  { %v222_v2 = vpop.f32.mrb[30].mxu0  ;;  %1792 = vmatprep.mubr.msk.bf16.mxu1 %vm2179_vm1, %v2178_v0  ;;  %1889 = vmatpush3.bf16.msra.mxu1 %v2129_v53 }
 0x129   :  { %v223_v3 = vadd.f32 %v2358_v58, %v222_v2  ;;  %v1727_v4 = vpop.f32.mrb[31].mxu0  ;;  %v279_v5 = vmax.f32 %v220_v63, 0.0  ;;  %1890 = vmatprep.subr.bf16.mxu1 %v2178_v0  ;;  %v2134_v2 = vld [vmem:[#allocation2 + $0xb8] sm:$0xff]  }
 0x12b   :  { %v280_v6 = vmax.f32 %v223_v3, 0.0 }
 0x12d   :  { %v297_v7 = vpack.c.bf16 %v280_v6, %v279_v5 }
 0x12e   :  { %v227_v8 = vpop.f32.mrb[32].mxu0 }
 0x12f   :  { %v228_v9 = vadd.f32 %v2358_v58, %v227_v8  ;;  %v1730_v10 = vpop.f32.mrb[33].mxu0  ;;  %1793 = vmatmul.mubr.bf16.gmra.mrb[28].mxu1 %v297_v7 }
 0x130   :  { %v230_v11 = vpop.f32.mrb[34].mxu0  ;;  %1796 = vmatprep.mubr.msk.bf16.mxu1 %vm2179_vm1, %v2178_v0 }
 0x131   :  { %v231_v12 = vadd.f32 %v2358_v58, %v230_v11  ;;  %v1731_v13 = vpop.f32.mrb[35].mxu0  ;;  %v281_v14 = vmax.f32 %v228_v9, 0.0 }
 0x133   :  { %v282_v15 = vmax.f32 %v231_v12, 0.0 }
 0x135   :  { %v298_v16 = vpack.c.bf16 %v282_v15, %v281_v14 }
 0x136   :  { %v235_v17 = vpop.f32.mrb[36].mxu0 }
 0x137   :  { %v236_v18 = vadd.f32 %v2358_v58, %v235_v17  ;;  %v1734_v19 = vpop.f32.mrb[37].mxu0  ;;  %1797 = vmatmul.mubr.bf16.gmra.mrb[32].mxu1 %v298_v16 }
 0x138   :  { %v238_v20 = vpop.f32.mrb[38].mxu0  ;;  %1800 = vmatprep.mubr.msk.bf16.mxu1 %vm2179_vm1, %v2178_v0 }
 0x139   :  { %v239_v21 = vadd.f32 %v2358_v58, %v238_v20  ;;  %v1735_v22 = vpop.f32.mrb[39].mxu0  ;;  %v283_v23 = vmax.f32 %v236_v18, 0.0 }
 0x13b   :  { %v284_v24 = vmax.f32 %v239_v21, 0.0 }
 0x13d   :  { %v299_v25 = vpack.c.bf16 %v284_v24, %v283_v23 }
 0x13e   :  { %v243_v26 = vpop.f32.mrb[40].mxu0 }
 0x13f   :  { %v244_v27 = vadd.f32 %v2358_v58, %v243_v26  ;;  %v1738_v28 = vpop.f32.mrb[41].mxu0  ;;  %1801 = vmatmul.mubr.bf16.gmra.mrb[36].mxu1 %v299_v25 }
 0x140   :  { %v246_v29 = vpop.f32.mrb[42].mxu0  ;;  %1804 = vmatprep.mubr.msk.bf16.mxu1 %vm2179_vm1, %v2178_v0 }
 0x141   :  { %v247_v30 = vadd.f32 %v2358_v58, %v246_v29  ;;  %v1739_v31 = vpop.f32.mrb[43].mxu0  ;;  %v285_v32 = vmax.f32 %v244_v27, 0.0 }
 0x143   :  { %v286_v33 = vmax.f32 %v247_v30, 0.0 }
 0x145   :  { %v300_v34 = vpack.c.bf16 %v286_v33, %v285_v32 }
 0x146   :  { %v251_v35 = vpop.f32.mrb[44].mxu0 }
 0x147   :  { %v252_v36 = vadd.f32 %v2358_v58, %v251_v35  ;;  %v1742_v37 = vpop.f32.mrb[45].mxu0  ;;  %1805 = vmatmul.mubr.bf16.gmra.mrb[40].mxu1 %v300_v34 }
 0x148   :  { %v254_v38 = vpop.f32.mrb[46].mxu0  ;;  %1808 = vmatprep.mubr.msk.bf16.mxu1 %vm2179_vm1, %v2178_v0 }
 0x149   :  { %v255_v39 = vadd.f32 %v2358_v58, %v254_v38  ;;  %v1743_v40 = vpop.f32.mrb[47].mxu0  ;;  %v287_v41 = vmax.f32 %v252_v36, 0.0 }
 0x14b   :  { %v288_v42 = vmax.f32 %v255_v39, 0.0 }
 0x14d   :  { %v301_v43 = vpack.c.bf16 %v288_v42, %v287_v41 }
 0x14e   :  { %v259_v44 = vpop.f32.mrb[48].mxu0 }
 0x14f   :  { %1809 = vmatmul.mubr.bf16.gmra.mrb[44].mxu1 %v301_v43  ;;  %v260_v45 = vadd.f32 %v2358_v58, %v259_v44  ;;  %v1746_v46 = vpop.f32.mrb[49].mxu0  ;;  %v2130_v58 = vld [vmem:[#allocation2 + $0x98] sm:$0xff]  }
 0x150   :  { %v262_v47 = vpop.f32.mrb[50].mxu0  ;;  %1812 = vmatprep.mubr.msk.bf16.mxu1 %vm2179_vm1, %v2178_v0  ;;  %1891 = vmatpush3.bf16.msra.mxu1 %v2130_v58 }
 0x151   :  { %v289_v48 = vmax.f32 %v260_v45, 0.0  ;;  %v1747_v49 = vpop.f32.mrb[51].mxu0  ;;  %1892 = vmatprep.subr.bf16.mxu1 %v2178_v0 }
 0x153   :  { %v302_v50 = vpack.c.bf16 %v289_v48, %v289_v48 }
 0x154   :  { %1893 = vmatpush3.bf16.msra.mxu1 %v2131_v54 }
 0x155   :  { %1894 = vmatprep.subr.bf16.mxu1 %v2178_v0 }
 0x157   :  { %1813 = vmatmul.mubr.bf16.gmra.mrb[48].mxu1 %v302_v50 }
 0x158   :  { %1900 = vmatprep.mubr.msk.bf16.mxu1 %vm2179_vm1, %v2178_v0  ;;  %1895 = vmatpush3.bf16.msra.mxu1 %v2132_v55 }
 0x159   :  { %1896 = vmatprep.subr.bf16.mxu1 %v2178_v0 }
 0x15c   :  { %1897 = vmatpush3.bf16.msra.mxu1 %v2133_v57 }
 0x15d   :  { %1898 = vmatprep.subr.bf16.mxu1 %v2178_v0 }
 0x160   :  { %1899 = vmatpush3.bf16.msra.mxu1 %v2134_v2 }
 0x161   :  { %2088 = vmatprep.subr.bf16.mxu1 %v2178_v0 }
 0x1ca   :  { %v406_v59 = vpop.f32.mrb[0].mxu1 }
 0x1cb   :  { %v407_v60 = vadd.f32 %v2422_v56, %v406_v59  ;;  %v1766_v61 = vpop.f32.mrb[1].mxu1 }
 0x1cc   :  { %v409_v62 = vpop.f32.mrb[2].mxu1 }
 0x1cd   :  { %v410_v63 = vadd.f32 %v2422_v56, %v409_v62  ;;  %v1767_v1 = vpop.f32.mrb[3].mxu1  ;;  %v508_v3 = vmax.f32 %v407_v60, 0.0 }
 0x1cf   :  { %v509_v4 = vmax.f32 %v410_v63, 0.0 }
 0x1d1   :  { %v533_v5 = vpack.c.bf16 %v509_v4, %v508_v3 }
 0x1d2   :  { %v414_v6 = vpop.f32.mrb[4].mxu1 }
 0x1d3   :  { %v415_v7 = vadd.f32 %v2422_v56, %v414_v6  ;;  %v1770_v8 = vpop.f32.mrb[5].mxu1  ;;  %1833 = vmatmul.mubr.bf16.vlgmr.msra.gmra.mrb[52].mxu0 %v533_v5 }
 0x1d4   :  { %v417_v9 = vpop.f32.mrb[6].mxu1  ;;  %1836 = vmatprep.mubr.msk.bf16.mxu0 %vm2179_vm1, %v2178_v0 }
 0x1d5   :  { %v418_v10 = vadd.f32 %v2422_v56, %v417_v9  ;;  %v1771_v11 = vpop.f32.mrb[7].mxu1  ;;  %v510_v12 = vmax.f32 %v415_v7, 0.0 }
 0x1d7   :  { %v511_v13 = vmax.f32 %v418_v10, 0.0 }
 0x1d9   :  { %v534_v14 = vpack.c.bf16 %v511_v13, %v510_v12 }
 0x1da   :  { %v422_v15 = vpop.f32.mrb[8].mxu1 }
 0x1db   :  { %v423_v16 = vadd.f32 %v2422_v56, %v422_v15  ;;  %v1774_v17 = vpop.f32.mrb[9].mxu1  ;;  %1837 = vmatmul.mubr.bf16.gmra.mrb[56].mxu0 %v534_v14 }
 0x1dc   :  { %v425_v18 = vpop.f32.mrb[10].mxu1  ;;  %1840 = vmatprep.mubr.msk.bf16.mxu0 %vm2179_vm1, %v2178_v0 }
 0x1dd   :  { %v426_v19 = vadd.f32 %v2422_v56, %v425_v18  ;;  %v1775_v20 = vpop.f32.mrb[11].mxu1  ;;  %v512_v21 = vmax.f32 %v423_v16, 0.0 }
 0x1df   :  { %v513_v22 = vmax.f32 %v426_v19, 0.0 }
 0x1e1   :  { %v535_v23 = vpack.c.bf16 %v513_v22, %v512_v21 }
 0x1e2   :  { %v430_v24 = vpop.f32.mrb[12].mxu1 }
 0x1e3   :  { %v431_v25 = vadd.f32 %v2422_v56, %v430_v24  ;;  %v1778_v26 = vpop.f32.mrb[13].mxu1  ;;  %1841 = vmatmul.mubr.bf16.gmra.mrb[60].mxu0 %v535_v23 }
 0x1e4   :  { %v433_v27 = vpop.f32.mrb[14].mxu1  ;;  %1844 = vmatprep.mubr.msk.bf16.mxu0 %vm2179_vm1, %v2178_v0 }
 0x1e5   :  { %v434_v28 = vadd.f32 %v2422_v56, %v433_v27  ;;  %v1779_v29 = vpop.f32.mrb[15].mxu1  ;;  %v514_v30 = vmax.f32 %v431_v25, 0.0 }
 0x1e7   :  { %v515_v31 = vmax.f32 %v434_v28, 0.0 }
 0x1e9   :  { %v536_v32 = vpack.c.bf16 %v515_v31, %v514_v30 }
 0x1ea   :  { %v438_v33 = vpop.f32.mrb[16].mxu1 }
 0x1eb   :  { %v439_v34 = vadd.f32 %v2422_v56, %v438_v33  ;;  %v1782_v35 = vpop.f32.mrb[17].mxu1  ;;  %1845 = vmatmul.mubr.bf16.gmra.mrb[64].mxu0 %v536_v32 }
 0x1ec   :  { %v441_v36 = vpop.f32.mrb[18].mxu1  ;;  %1848 = vmatprep.mubr.msk.bf16.mxu0 %vm2179_vm1, %v2178_v0 }
 0x1ed   :  { %v442_v37 = vadd.f32 %v2422_v56, %v441_v36  ;;  %v1783_v38 = vpop.f32.mrb[19].mxu1  ;;  %v516_v39 = vmax.f32 %v439_v34, 0.0 }
 0x1ef   :  { %v517_v40 = vmax.f32 %v442_v37, 0.0 }
 0x1f1   :  { %v537_v41 = vpack.c.bf16 %v517_v40, %v516_v39 }
 0x1f2   :  { %v446_v42 = vpop.f32.mrb[20].mxu1 }
 0x1f3   :  { %v447_v43 = vadd.f32 %v2422_v56, %v446_v42  ;;  %v1786_v44 = vpop.f32.mrb[21].mxu1  ;;  %1849 = vmatmul.mubr.bf16.gmra.mrb[68].mxu0 %v537_v41 }
 0x1f4   :  { %v449_v45 = vpop.f32.mrb[22].mxu1  ;;  %1852 = vmatprep.mubr.msk.bf16.mxu0 %vm2179_vm1, %v2178_v0 }
 0x1f5   :  { %v450_v46 = vadd.f32 %v2422_v56, %v449_v45  ;;  %v1787_v47 = vpop.f32.mrb[23].mxu1  ;;  %v518_v48 = vmax.f32 %v447_v43, 0.0 }
 0x1f7   :  { %v519_v49 = vmax.f32 %v450_v46, 0.0 }
 0x1f9   :  { %v538_v50 = vpack.c.bf16 %v519_v49, %v518_v48 }
 0x1fa   :  { %v454_v51 = vpop.f32.mrb[24].mxu1 }
 0x1fb   :  { %v455_v52 = vadd.f32 %v2422_v56, %v454_v51  ;;  %v1790_v53 = vpop.f32.mrb[25].mxu1  ;;  %1853 = vmatmul.mubr.bf16.gmra.mrb[72].mxu0 %v538_v50  ;;  %v2135_v50 = vld [vmem:[#allocation2 + $0xc0] sm:$0xff]   ;;  %v2136_v51 = vld [vmem:[#allocation2 + $0xc8] sm:$0xff]  }
 0x1fc   :  { %v457_v58 = vpop.f32.mrb[26].mxu1  ;;  %1856 = vmatprep.mubr.msk.bf16.mxu0 %vm2179_vm1, %v2178_v0  ;;  %1953 = vmatpush3.bf16.msra.mxu0 %v2135_v50  ;;  %v2139_v53 = vld [vmem:[#allocation2 + $0xe0] sm:$0xff]  }
 0x1fd   :  { %v458_v54 = vadd.f32 %v2422_v56, %v457_v58  ;;  %v1791_v55 = vpop.f32.mrb[27].mxu1  ;;  %v520_v57 = vmax.f32 %v455_v52, 0.0  ;;  %1954 = vmatprep.subr.bf16.mxu0 %v2178_v0  ;;  %v2137_v52 = vld [vmem:[#allocation2 + $0xd0] sm:$0xff]   ;;  %v2140_v58 = vld [vmem:[#allocation2 + $0xe8] sm:$0xff]  }
 0x1fe   :  { %v2141_v55 = vld [vmem:[#allocation2 + $0xf0] sm:$0xff]  }
 0x1ff   :  { %v521_v59 = vmax.f32 %v458_v54, 0.0  ;;  %v2486_v54 = vld [vmem:[%s2797_s3 + $0x2] ss:$0 sm:$0xff] }
 0x200   :  { %1955 = vmatpush3.bf16.msra.mxu0 %v2136_v51 }
 0x201   :  { %v539_v60 = vpack.c.bf16 %v521_v59, %v520_v57  ;;  %1956 = vmatprep.subr.bf16.mxu0 %v2178_v0 }
 0x202   :  { %v462_v61 = vpop.f32.mrb[28].mxu1 }
 0x203   :  { %v463_v62 = vadd.f32 %v2422_v56, %v462_v61  ;;  %v1794_v63 = vpop.f32.mrb[29].mxu1  ;;  %1857 = vmatmul.mubr.bf16.gmra.mrb[76].mxu0 %v539_v60 }
 0x204   :  { %v465_v1 = vpop.f32.mrb[30].mxu1  ;;  %1860 = vmatprep.mubr.msk.bf16.mxu0 %vm2179_vm1, %v2178_v0  ;;  %1957 = vmatpush3.bf16.msra.mxu0 %v2137_v52 }
 0x205   :  { %v466_v2 = vadd.f32 %v2422_v56, %v465_v1  ;;  %v1795_v3 = vpop.f32.mrb[31].mxu1  ;;  %v522_v4 = vmax.f32 %v463_v62, 0.0  ;;  %1958 = vmatprep.subr.bf16.mxu0 %v2178_v0  ;;  %v2142_v1 = vld [vmem:[#allocation2 + $0xf8] sm:$0xff]  }
 0x207   :  { %v523_v5 = vmax.f32 %v466_v2, 0.0 }
 0x209   :  { %v540_v6 = vpack.c.bf16 %v523_v5, %v522_v4 }
 0x20a   :  { %v470_v7 = vpop.f32.mrb[32].mxu1 }
 0x20b   :  { %v471_v8 = vadd.f32 %v2422_v56, %v470_v7  ;;  %v1798_v9 = vpop.f32.mrb[33].mxu1  ;;  %1861 = vmatmul.mubr.bf16.gmra.mrb[80].mxu0 %v540_v6 }
 0x20c   :  { %v473_v10 = vpop.f32.mrb[34].mxu1  ;;  %1864 = vmatprep.mubr.msk.bf16.mxu0 %vm2179_vm1, %v2178_v0 }
 0x20d   :  { %v474_v11 = vadd.f32 %v2422_v56, %v473_v10  ;;  %v1799_v12 = vpop.f32.mrb[35].mxu1  ;;  %v524_v13 = vmax.f32 %v471_v8, 0.0 }
 0x20f   :  { %v525_v14 = vmax.f32 %v474_v11, 0.0 }
 0x211   :  { %v541_v15 = vpack.c.bf16 %v525_v14, %v524_v13 }
 0x212   :  { %v478_v16 = vpop.f32.mrb[36].mxu1 }
 0x213   :  { %v479_v17 = vadd.f32 %v2422_v56, %v478_v16  ;;  %v1802_v18 = vpop.f32.mrb[37].mxu1  ;;  %1865 = vmatmul.mubr.bf16.gmra.mrb[84].mxu0 %v541_v15 }
 0x214   :  { %v481_v19 = vpop.f32.mrb[38].mxu1  ;;  %1868 = vmatprep.mubr.msk.bf16.mxu0 %vm2179_vm1, %v2178_v0 }
 0x215   :  { %v482_v20 = vadd.f32 %v2422_v56, %v481_v19  ;;  %v1803_v21 = vpop.f32.mrb[39].mxu1  ;;  %v526_v22 = vmax.f32 %v479_v17, 0.0 }
 0x217   :  { %v527_v23 = vmax.f32 %v482_v20, 0.0 }
 0x219   :  { %v542_v24 = vpack.c.bf16 %v527_v23, %v526_v22 }
 0x21a   :  { %v486_v25 = vpop.f32.mrb[40].mxu1 }
 0x21b   :  { %v487_v26 = vadd.f32 %v2422_v56, %v486_v25  ;;  %v1806_v27 = vpop.f32.mrb[41].mxu1  ;;  %1869 = vmatmul.mubr.bf16.gmra.mrb[88].mxu0 %v542_v24 }
 0x21c   :  { %v489_v28 = vpop.f32.mrb[42].mxu1  ;;  %1872 = vmatprep.mubr.msk.bf16.mxu0 %vm2179_vm1, %v2178_v0 }
 0x21d   :  { %v490_v29 = vadd.f32 %v2422_v56, %v489_v28  ;;  %v1807_v30 = vpop.f32.mrb[43].mxu1  ;;  %v528_v31 = vmax.f32 %v487_v26, 0.0 }
 0x21f   :  { %v529_v32 = vmax.f32 %v490_v29, 0.0 }
 0x221   :  { %v543_v33 = vpack.c.bf16 %v529_v32, %v528_v31 }
 0x222   :  { %v494_v34 = vpop.f32.mrb[44].mxu1 }
 0x223   :  { %v495_v35 = vadd.f32 %v2422_v56, %v494_v34  ;;  %v1810_v36 = vpop.f32.mrb[45].mxu1  ;;  %1873 = vmatmul.mubr.bf16.gmra.mrb[92].mxu0 %v543_v33 }
 0x224   :  { %v497_v37 = vpop.f32.mrb[46].mxu1  ;;  %1876 = vmatprep.mubr.msk.bf16.mxu0 %vm2179_vm1, %v2178_v0 }
 0x225   :  { %v498_v38 = vadd.f32 %v2422_v56, %v497_v37  ;;  %v1811_v39 = vpop.f32.mrb[47].mxu1  ;;  %v530_v40 = vmax.f32 %v495_v35, 0.0 }
 0x227   :  { %v531_v41 = vmax.f32 %v498_v38, 0.0 }
 0x229   :  { %v544_v42 = vpack.c.bf16 %v531_v41, %v530_v40 }
 0x22a   :  { %v502_v43 = vpop.f32.mrb[48].mxu1 }
 0x22b   :  { %1877 = vmatmul.mubr.bf16.gmra.mrb[96].mxu0 %v544_v42  ;;  %v503_v44 = vadd.f32 %v2422_v56, %v502_v43  ;;  %v1814_v45 = vpop.f32.mrb[49].mxu1  ;;  %v2138_v56 = vld [vmem:[#allocation2 + $0xd8] sm:$0xff]  }
 0x22c   :  { %v505_v46 = vpop.f32.mrb[50].mxu1  ;;  %1880 = vmatprep.mubr.msk.bf16.mxu0 %vm2179_vm1, %v2178_v0  ;;  %1959 = vmatpush3.bf16.msra.mxu0 %v2138_v56 }
 0x22d   :  { %v532_v47 = vmax.f32 %v503_v44, 0.0  ;;  %v1815_v48 = vpop.f32.mrb[51].mxu1  ;;  %1960 = vmatprep.subr.bf16.mxu0 %v2178_v0 }
 0x22f   :  { %v545_v49 = vpack.c.bf16 %v532_v47, %v532_v47 }
 0x230   :  { %1961 = vmatpush3.bf16.msra.mxu0 %v2139_v53 }
 0x231   :  { %1962 = vmatprep.subr.bf16.mxu0 %v2178_v0 }
 0x233   :  { %1881 = vmatmul.mubr.bf16.gmra.mrb[100].mxu0 %v545_v49 }
 0x234   :  { %1968 = vmatprep.mubr.msk.bf16.mxu0 %vm2179_vm1, %v2178_v0  ;;  %1963 = vmatpush3.bf16.msra.mxu0 %v2140_v58 }
 0x235   :  { %1964 = vmatprep.subr.bf16.mxu0 %v2178_v0 }
 0x238   :  { %1965 = vmatpush3.bf16.msra.mxu0 %v2141_v55 }
 0x239   :  { %1966 = vmatprep.subr.bf16.mxu0 %v2178_v0 }
 0x23c   :  { %1967 = vmatpush3.bf16.msra.mxu0 %v2142_v1 }
 0x23d   :  { %2020 = vmatprep.subr.bf16.mxu0 %v2178_v0 }
 0x2a6   :  { %v650_v57 = vpop.f32.mrb[52].mxu0 }
 0x2a7   :  { %v651_v59 = vadd.f32 %v2486_v54, %v650_v57  ;;  %v1834_v60 = vpop.f32.mrb[53].mxu0 }
 0x2a8   :  { %v653_v61 = vpop.f32.mrb[54].mxu0 }
 0x2a9   :  { %v654_v62 = vadd.f32 %v2486_v54, %v653_v61  ;;  %v1835_v63 = vpop.f32.mrb[55].mxu0  ;;  %v752_v2 = vmax.f32 %v651_v59, 0.0 }
 0x2ab   :  { %v753_v3 = vmax.f32 %v654_v62, 0.0 }
 0x2ad   :  { %v777_v4 = vpack.c.bf16 %v753_v3, %v752_v2 }
 0x2ae   :  { %v658_v5 = vpop.f32.mrb[56].mxu0 }
 0x2af   :  { %v659_v6 = vadd.f32 %v2486_v54, %v658_v5  ;;  %v1838_v7 = vpop.f32.mrb[57].mxu0  ;;  %1901 = vmatmul.mubr.bf16.vlgmr.msra.gmra.mrb[52].mxu1 %v777_v4 }
 0x2b0   :  { %v661_v8 = vpop.f32.mrb[58].mxu0  ;;  %1904 = vmatprep.mubr.msk.bf16.mxu1 %vm2179_vm1, %v2178_v0 }
 0x2b1   :  { %v662_v9 = vadd.f32 %v2486_v54, %v661_v8  ;;  %v1839_v10 = vpop.f32.mrb[59].mxu0  ;;  %v754_v11 = vmax.f32 %v659_v6, 0.0 }
 0x2b3   :  { %v755_v12 = vmax.f32 %v662_v9, 0.0 }
 0x2b5   :  { %v778_v13 = vpack.c.bf16 %v755_v12, %v754_v11 }
 0x2b6   :  { %v666_v14 = vpop.f32.mrb[60].mxu0 }
 0x2b7   :  { %v667_v15 = vadd.f32 %v2486_v54, %v666_v14  ;;  %v1842_v16 = vpop.f32.mrb[61].mxu0  ;;  %1905 = vmatmul.mubr.bf16.gmra.mrb[56].mxu1 %v778_v13 }
 0x2b8   :  { %v669_v17 = vpop.f32.mrb[62].mxu0  ;;  %1908 = vmatprep.mubr.msk.bf16.mxu1 %vm2179_vm1, %v2178_v0 }
 0x2b9   :  { %v670_v18 = vadd.f32 %v2486_v54, %v669_v17  ;;  %v1843_v19 = vpop.f32.mrb[63].mxu0  ;;  %v756_v20 = vmax.f32 %v667_v15, 0.0 }
 0x2bb   :  { %v757_v21 = vmax.f32 %v670_v18, 0.0 }
 0x2bd   :  { %v779_v22 = vpack.c.bf16 %v757_v21, %v756_v20 }
 0x2be   :  { %v674_v23 = vpop.f32.mrb[64].mxu0 }
 0x2bf   :  { %v675_v24 = vadd.f32 %v2486_v54, %v674_v23  ;;  %v1846_v25 = vpop.f32.mrb[65].mxu0  ;;  %1909 = vmatmul.mubr.bf16.gmra.mrb[60].mxu1 %v779_v22 }
 0x2c0   :  { %v677_v26 = vpop.f32.mrb[66].mxu0  ;;  %1912 = vmatprep.mubr.msk.bf16.mxu1 %vm2179_vm1, %v2178_v0 }
 0x2c1   :  { %v678_v27 = vadd.f32 %v2486_v54, %v677_v26  ;;  %v1847_v28 = vpop.f32.mrb[67].mxu0  ;;  %v758_v29 = vmax.f32 %v675_v24, 0.0 }
 0x2c3   :  { %v759_v30 = vmax.f32 %v678_v27, 0.0 }
 0x2c5   :  { %v780_v31 = vpack.c.bf16 %v759_v30, %v758_v29 }
 0x2c6   :  { %v682_v32 = vpop.f32.mrb[68].mxu0 }
 0x2c7   :  { %v683_v33 = vadd.f32 %v2486_v54, %v682_v32  ;;  %v1850_v34 = vpop.f32.mrb[69].mxu0  ;;  %1913 = vmatmul.mubr.bf16.gmra.mrb[64].mxu1 %v780_v31 }
 0x2c8   :  { %v685_v35 = vpop.f32.mrb[70].mxu0  ;;  %1916 = vmatprep.mubr.msk.bf16.mxu1 %vm2179_vm1, %v2178_v0 }
 0x2c9   :  { %v686_v36 = vadd.f32 %v2486_v54, %v685_v35  ;;  %v1851_v37 = vpop.f32.mrb[71].mxu0  ;;  %v760_v38 = vmax.f32 %v683_v33, 0.0 }
 0x2cb   :  { %v761_v39 = vmax.f32 %v686_v36, 0.0 }
 0x2cd   :  { %v781_v40 = vpack.c.bf16 %v761_v39, %v760_v38 }
 0x2ce   :  { %v690_v41 = vpop.f32.mrb[72].mxu0 }
 0x2cf   :  { %v691_v42 = vadd.f32 %v2486_v54, %v690_v41  ;;  %v1854_v43 = vpop.f32.mrb[73].mxu0  ;;  %1917 = vmatmul.mubr.bf16.gmra.mrb[68].mxu1 %v781_v40 }
 0x2d0   :  { %v693_v44 = vpop.f32.mrb[74].mxu0  ;;  %1920 = vmatprep.mubr.msk.bf16.mxu1 %vm2179_vm1, %v2178_v0 }
 0x2d1   :  { %v694_v45 = vadd.f32 %v2486_v54, %v693_v44  ;;  %v1855_v46 = vpop.f32.mrb[75].mxu0  ;;  %v762_v47 = vmax.f32 %v691_v42, 0.0 }
 0x2d3   :  { %v763_v48 = vmax.f32 %v694_v45, 0.0 }
 0x2d5   :  { %v782_v49 = vpack.c.bf16 %v763_v48, %v762_v47 }
 0x2d6   :  { %v698_v50 = vpop.f32.mrb[76].mxu0 }
 0x2d7   :  { %v699_v51 = vadd.f32 %v2486_v54, %v698_v50  ;;  %v1858_v52 = vpop.f32.mrb[77].mxu0  ;;  %1921 = vmatmul.mubr.bf16.gmra.mrb[72].mxu1 %v782_v49  ;;  %v2143_v49 = vld [vmem:[#allocation2 + $0x100] sm:$0xff]   ;;  %v2144_v50 = vld [vmem:[#allocation2 + $0x108] sm:$0xff]  }
 0x2d8   :  { %v701_v56 = vpop.f32.mrb[78].mxu0  ;;  %1924 = vmatprep.mubr.msk.bf16.mxu1 %vm2179_vm1, %v2178_v0  ;;  %2096 = vmatpush3.bf16.msra.mxu1 %v2143_v49  ;;  %v2147_v52 = vld [vmem:[#allocation2 + $0x120] sm:$0xff]  }
 0x2d9   :  { %v702_v53 = vadd.f32 %v2486_v54, %v701_v56  ;;  %v1859_v58 = vpop.f32.mrb[79].mxu0  ;;  %v764_v55 = vmax.f32 %v699_v51, 0.0  ;;  %2089 = vmatprep.subr.bf16.mxu1 %v2178_v0  ;;  %v2146_v51 = vld [vmem:[#allocation2 + $0x118] sm:$0xff]   ;;  %v2148_v56 = vld [vmem:[#allocation2 + $0x128] sm:$0xff]  }
 0x2db   :  { %v765_v57 = vmax.f32 %v702_v53, 0.0  ;;  %v2550_v53 = vld [vmem:[%s2797_s3 + $0x3] ss:$0 sm:$0xff] }
 0x2dc   :  { %2097 = vmatpush3.bf16.msra.mxu1 %v2144_v50 }
 0x2dd   :  { %v783_v59 = vpack.c.bf16 %v765_v57, %v764_v55  ;;  %2090 = vmatprep.subr.bf16.mxu1 %v2178_v0 }
 0x2de   :  { %v706_v60 = vpop.f32.mrb[80].mxu0 }
 0x2df   :  { %v707_v61 = vadd.f32 %v2486_v54, %v706_v60  ;;  %v1862_v62 = vpop.f32.mrb[81].mxu0  ;;  %1925 = vmatmul.mubr.bf16.gmra.mrb[76].mxu1 %v783_v59  ;;  %v2149_v59 = vld [vmem:[#allocation2 + $0x130] sm:$0xff]  }
 0x2e0   :  { %v709_v63 = vpop.f32.mrb[82].mxu0  ;;  %1928 = vmatprep.mubr.msk.bf16.mxu1 %vm2179_vm1, %v2178_v0 }
 0x2e1   :  { %v710_v1 = vadd.f32 %v2486_v54, %v709_v63  ;;  %v1863_v2 = vpop.f32.mrb[83].mxu0  ;;  %v766_v3 = vmax.f32 %v707_v61, 0.0 }
 0x2e3   :  { %v767_v4 = vmax.f32 %v710_v1, 0.0 }
 0x2e5   :  { %v784_v5 = vpack.c.bf16 %v767_v4, %v766_v3 }
 0x2e6   :  { %v714_v6 = vpop.f32.mrb[84].mxu0 }
 0x2e7   :  { %v715_v7 = vadd.f32 %v2486_v54, %v714_v6  ;;  %v1866_v8 = vpop.f32.mrb[85].mxu0  ;;  %1929 = vmatmul.mubr.bf16.gmra.mrb[80].mxu1 %v784_v5 }
 0x2e8   :  { %v717_v9 = vpop.f32.mrb[86].mxu0  ;;  %1932 = vmatprep.mubr.msk.bf16.mxu1 %vm2179_vm1, %v2178_v0 }
 0x2e9   :  { %v718_v10 = vadd.f32 %v2486_v54, %v717_v9  ;;  %v1867_v11 = vpop.f32.mrb[87].mxu0  ;;  %v768_v12 = vmax.f32 %v715_v7, 0.0 }
 0x2eb   :  { %v769_v13 = vmax.f32 %v718_v10, 0.0 }
 0x2ed   :  { %v785_v14 = vpack.c.bf16 %v769_v13, %v768_v12 }
 0x2ee   :  { %v722_v15 = vpop.f32.mrb[88].mxu0 }
 0x2ef   :  { %v723_v16 = vadd.f32 %v2486_v54, %v722_v15  ;;  %v1870_v17 = vpop.f32.mrb[89].mxu0  ;;  %1933 = vmatmul.mubr.bf16.gmra.mrb[84].mxu1 %v785_v14 }
 0x2f0   :  { %v725_v18 = vpop.f32.mrb[90].mxu0  ;;  %1936 = vmatprep.mubr.msk.bf16.mxu1 %vm2179_vm1, %v2178_v0 }
 0x2f1   :  { %v726_v19 = vadd.f32 %v2486_v54, %v725_v18  ;;  %v1871_v20 = vpop.f32.mrb[91].mxu0  ;;  %v770_v21 = vmax.f32 %v723_v16, 0.0 }
 0x2f3   :  { %v771_v22 = vmax.f32 %v726_v19, 0.0 }
 0x2f5   :  { %v786_v23 = vpack.c.bf16 %v771_v22, %v770_v21 }
 0x2f6   :  { %v730_v24 = vpop.f32.mrb[92].mxu0 }
 0x2f7   :  { %v731_v25 = vadd.f32 %v2486_v54, %v730_v24  ;;  %v1874_v26 = vpop.f32.mrb[93].mxu0  ;;  %1937 = vmatmul.mubr.bf16.gmra.mrb[88].mxu1 %v786_v23 }
 0x2f8   :  { %v733_v27 = vpop.f32.mrb[94].mxu0  ;;  %1940 = vmatprep.mubr.msk.bf16.mxu1 %vm2179_vm1, %v2178_v0 }
 0x2f9   :  { %v734_v28 = vadd.f32 %v2486_v54, %v733_v27  ;;  %v1875_v29 = vpop.f32.mrb[95].mxu0  ;;  %v772_v30 = vmax.f32 %v731_v25, 0.0 }
 0x2fb   :  { %v773_v31 = vmax.f32 %v734_v28, 0.0 }
 0x2fd   :  { %v787_v32 = vpack.c.bf16 %v773_v31, %v772_v30 }
 0x2fe   :  { %v738_v33 = vpop.f32.mrb[96].mxu0 }
 0x2ff   :  { %v739_v34 = vadd.f32 %v2486_v54, %v738_v33  ;;  %v1878_v35 = vpop.f32.mrb[97].mxu0  ;;  %1941 = vmatmul.mubr.bf16.gmra.mrb[92].mxu1 %v787_v32 }
 0x300   :  { %v741_v36 = vpop.f32.mrb[98].mxu0  ;;  %1944 = vmatprep.mubr.msk.bf16.mxu1 %vm2179_vm1, %v2178_v0 }
 0x301   :  { %v742_v37 = vadd.f32 %v2486_v54, %v741_v36  ;;  %v1879_v38 = vpop.f32.mrb[99].mxu0  ;;  %v774_v39 = vmax.f32 %v739_v34, 0.0 }
 0x303   :  { %v775_v40 = vmax.f32 %v742_v37, 0.0 }
 0x305   :  { %v788_v41 = vpack.c.bf16 %v775_v40, %v774_v39 }
 0x306   :  { %v746_v42 = vpop.f32.mrb[100].mxu0 }
 0x307   :  { %1945 = vmatmul.mubr.bf16.gmra.mrb[96].mxu1 %v788_v41  ;;  %v747_v43 = vadd.f32 %v2486_v54, %v746_v42  ;;  %v1882_v44 = vpop.f32.mrb[101].mxu0  ;;  %v2145_v54 = vld [vmem:[#allocation2 + $0x110] sm:$0xff]  }
 0x308   :  { %v749_v45 = vpop.f32.mrb[102].mxu0  ;;  %1948 = vmatprep.mubr.msk.bf16.mxu1 %vm2179_vm1, %v2178_v0  ;;  %2098 = vmatpush3.bf16.msra.mxu1 %v2145_v54 }
 0x309   :  { %v776_v46 = vmax.f32 %v747_v43, 0.0  ;;  %v1883_v47 = vpop.f32.mrb[103].mxu0  ;;  %2091 = vmatprep.subr.bf16.mxu1 %v2178_v0 }
 0x30b   :  { %v789_v48 = vpack.c.bf16 %v776_v46, %v776_v46 }
 0x30c   :  { %2099 = vmatpush3.bf16.msra.mxu1 %v2146_v51 }
 0x30d   :  { %2092 = vmatprep.subr.bf16.mxu1 %v2178_v0 }
 0x30f   :  { %1949 = vmatmul.mubr.bf16.gmra.mrb[100].mxu1 %v789_v48 }
 0x310   :  { %2040 = vmatprep.mubr.msk.bf16.mxu1 %vm2179_vm1, %v2178_v0  ;;  %2100 = vmatpush3.bf16.msra.mxu1 %v2147_v52 }
 0x311   :  { %2093 = vmatprep.subr.bf16.mxu1 %v2178_v0 }
 0x314   :  { %2101 = vmatpush3.bf16.msra.mxu1 %v2148_v56 }
 0x315   :  { %2094 = vmatprep.subr.bf16.mxu1 %v2178_v0 }
 0x318   :  { %2102 = vmatpush3.bf16.msra.mxu1 %v2149_v59 }
 0x319   :  { %2095 = vmatprep.subr.bf16.mxu1 %v2178_v0 }
 0x382   :  { %v894_v58 = vpop.f32.mrb[52].mxu1 }
 0x383   :  { %v895_v55 = vadd.f32 %v2550_v53, %v894_v58  ;;  %v1902_v57 = vpop.f32.mrb[53].mxu1 }
 0x384   :  { %v897_v60 = vpop.f32.mrb[54].mxu1 }
 0x385   :  { %v898_v61 = vadd.f32 %v2550_v53, %v897_v60  ;;  %v1903_v62 = vpop.f32.mrb[55].mxu1  ;;  %v996_v63 = vmax.f32 %v895_v55, 0.0 }
 0x387   :  { %v997_v1 = vmax.f32 %v898_v61, 0.0 }
 0x389   :  { %v1021_v2 = vpack.c.bf16 %v997_v1, %v996_v63 }
 0x38a   :  { %v902_v3 = vpop.f32.mrb[56].mxu1 }
 0x38b   :  { %v903_v4 = vadd.f32 %v2550_v53, %v902_v3  ;;  %v1906_v5 = vpop.f32.mrb[57].mxu1  ;;  %1969 = vmatmul.mubr.bf16.vlgmr.msra.gmra.mrb[104].mxu0 %v1021_v2 }
 0x38c   :  { %v905_v6 = vpop.f32.mrb[58].mxu1  ;;  %1972 = vmatprep.mubr.msk.bf16.mxu0 %vm2179_vm1, %v2178_v0  ;;  %2021 = vmatpush3.bf16.msra.mxu0 %v2143_v49 }
 0x38d   :  { %v906_v7 = vadd.f32 %v2550_v53, %v905_v6  ;;  %v1907_v8 = vpop.f32.mrb[59].mxu1  ;;  %2022 = vmatprep.subr.bf16.mxu0 %v2178_v0  ;;  %v998_v9 = vmax.f32 %v903_v4, 0.0 }
 0x38f   :  { %v999_v10 = vmax.f32 %v906_v7, 0.0 }
 0x390   :  { %2023 = vmatpush3.bf16.msra.mxu0 %v2144_v50 }
 0x391   :  { %v1022_v11 = vpack.c.bf16 %v999_v10, %v998_v9  ;;  %2024 = vmatprep.subr.bf16.mxu0 %v2178_v0 }
 0x392   :  { %v910_v12 = vpop.f32.mrb[60].mxu1 }
 0x393   :  { %v911_v13 = vadd.f32 %v2550_v53, %v910_v12  ;;  %v1910_v14 = vpop.f32.mrb[61].mxu1  ;;  %1973 = vmatmul.mubr.bf16.gmra.mrb[108].mxu0 %v1022_v11 }
 0x394   :  { %v913_v15 = vpop.f32.mrb[62].mxu1  ;;  %1976 = vmatprep.mubr.msk.bf16.mxu0 %vm2179_vm1, %v2178_v0  ;;  %2025 = vmatpush3.bf16.msra.mxu0 %v2145_v54 }
 0x395   :  { %v914_v16 = vadd.f32 %v2550_v53, %v913_v15  ;;  %v1911_v17 = vpop.f32.mrb[63].mxu1  ;;  %2026 = vmatprep.subr.bf16.mxu0 %v2178_v0  ;;  %v1000_v18 = vmax.f32 %v911_v13, 0.0 }
 0x397   :  { %v1001_v19 = vmax.f32 %v914_v16, 0.0 }
 0x398   :  { %2027 = vmatpush3.bf16.msra.mxu0 %v2146_v51 }
 0x399   :  { %v1023_v20 = vpack.c.bf16 %v1001_v19, %v1000_v18  ;;  %2028 = vmatprep.subr.bf16.mxu0 %v2178_v0 }
 0x39a   :  { %v918_v21 = vpop.f32.mrb[64].mxu1 }
 0x39b   :  { %v919_v22 = vadd.f32 %v2550_v53, %v918_v21  ;;  %v1914_v23 = vpop.f32.mrb[65].mxu1  ;;  %1977 = vmatmul.mubr.bf16.gmra.mrb[112].mxu0 %v1023_v20 }
 0x39c   :  { %v921_v24 = vpop.f32.mrb[66].mxu1  ;;  %1980 = vmatprep.mubr.msk.bf16.mxu0 %vm2179_vm1, %v2178_v0  ;;  %2029 = vmatpush3.bf16.msra.mxu0 %v2147_v52 }
 0x39d   :  { %v922_v25 = vadd.f32 %v2550_v53, %v921_v24  ;;  %v1915_v26 = vpop.f32.mrb[67].mxu1  ;;  %2030 = vmatprep.subr.bf16.mxu0 %v2178_v0  ;;  %v1002_v27 = vmax.f32 %v919_v22, 0.0 }
 0x39f   :  { %v1003_v28 = vmax.f32 %v922_v25, 0.0 }
 0x3a0   :  { %2031 = vmatpush3.bf16.msra.mxu0 %v2148_v56 }
 0x3a1   :  { %v1024_v29 = vpack.c.bf16 %v1003_v28, %v1002_v27  ;;  %2032 = vmatprep.subr.bf16.mxu0 %v2178_v0 }
 0x3a2   :  { %v926_v30 = vpop.f32.mrb[68].mxu1 }
 0x3a3   :  { %v927_v31 = vadd.f32 %v2550_v53, %v926_v30  ;;  %v1918_v32 = vpop.f32.mrb[69].mxu1  ;;  %1981 = vmatmul.mubr.bf16.gmra.mrb[116].mxu0 %v1024_v29 }
 0x3a4   :  { %v929_v33 = vpop.f32.mrb[70].mxu1  ;;  %1984 = vmatprep.mubr.msk.bf16.mxu0 %vm2179_vm1, %v2178_v0  ;;  %2033 = vmatpush3.bf16.msra.mxu0 %v2149_v59 }
 0x3a5   :  { %v930_v34 = vadd.f32 %v2550_v53, %v929_v33  ;;  %v1919_v35 = vpop.f32.mrb[71].mxu1  ;;  %2034 = vmatprep.subr.bf16.mxu0 %v2178_v0  ;;  %v1004_v36 = vmax.f32 %v927_v31, 0.0 }
 0x3a7   :  { %v1005_v37 = vmax.f32 %v930_v34, 0.0 }
 0x3a9   :  { %v1025_v38 = vpack.c.bf16 %v1005_v37, %v1004_v36 }
 0x3aa   :  { %v934_v39 = vpop.f32.mrb[72].mxu1 }
 0x3ab   :  { %v935_v40 = vadd.f32 %v2550_v53, %v934_v39  ;;  %v1922_v41 = vpop.f32.mrb[73].mxu1  ;;  %1985 = vmatmul.mubr.bf16.gmra.mrb[120].mxu0 %v1025_v38 }
 0x3ac   :  { %v937_v42 = vpop.f32.mrb[74].mxu1  ;;  %1988 = vmatprep.mubr.msk.bf16.mxu0 %vm2179_vm1, %v2178_v0  ;;  %v2150_v41 = vld [vmem:[#allocation2 + $0x138] sm:$0xff]  }
 0x3ad   :  { %v938_v43 = vadd.f32 %v2550_v53, %v937_v42  ;;  %v1923_v44 = vpop.f32.mrb[75].mxu1  ;;  %v1006_v45 = vmax.f32 %v935_v40, 0.0  ;;  %2103 = vmatpush3.bf16.msra.mxu1 %v2150_v41  ;;  %2035 = vmatpush3.bf16.msra.mxu0 %v2150_v41 }
 0x3af   :  { %v1007_v46 = vmax.f32 %v938_v43, 0.0 }
 0x3b1   :  { %v1026_v47 = vpack.c.bf16 %v1007_v46, %v1006_v45 }
 0x3b2   :  { %v942_v48 = vpop.f32.mrb[76].mxu1 }
 0x3b3   :  { %v943_v49 = vadd.f32 %v2550_v53, %v942_v48  ;;  %v1926_v50 = vpop.f32.mrb[77].mxu1  ;;  %1989 = vmatmul.mubr.bf16.gmra.mrb[124].mxu0 %v1026_v47  ;;  %v2615_v48 = vld [vmem:[%s2797_s3 + $0x4] ss:$0 sm:$0xff] }
 0x3b4   :  { %v945_v54 = vpop.f32.mrb[78].mxu1  ;;  %1992 = vmatprep.mubr.msk.bf16.mxu0 %vm2179_vm1, %v2178_v0 }
 0x3b5   :  { %v946_v51 = vadd.f32 %v2550_v53, %v945_v54  ;;  %v1927_v52 = vpop.f32.mrb[79].mxu1  ;;  %v1008_v56 = vmax.f32 %v943_v49, 0.0 }
 0x3b7   :  { %v1009_v58 = vmax.f32 %v946_v51, 0.0 }
 0x3b9   :  { %v1027_v55 = vpack.c.bf16 %v1009_v58, %v1008_v56 }
 0x3ba   :  { %v950_v57 = vpop.f32.mrb[80].mxu1 }
 0x3bb   :  { %v951_v59 = vadd.f32 %v2550_v53, %v950_v57  ;;  %v1930_v60 = vpop.f32.mrb[81].mxu1  ;;  %1993 = vmatmul.mubr.bf16.gmra.mrb[128].mxu0 %v1027_v55 }
 0x3bc   :  { %v953_v61 = vpop.f32.mrb[82].mxu1  ;;  %1996 = vmatprep.mubr.msk.bf16.mxu0 %vm2179_vm1, %v2178_v0 }
 0x3bd   :  { %v954_v62 = vadd.f32 %v2550_v53, %v953_v61  ;;  %v1931_v63 = vpop.f32.mrb[83].mxu1  ;;  %v1010_v1 = vmax.f32 %v951_v59, 0.0 }
 0x3bf   :  { %v1011_v2 = vmax.f32 %v954_v62, 0.0 }
 0x3c1   :  { %v1028_v3 = vpack.c.bf16 %v1011_v2, %v1010_v1 }
 0x3c2   :  { %v958_v4 = vpop.f32.mrb[84].mxu1 }
 0x3c3   :  { %v959_v5 = vadd.f32 %v2550_v53, %v958_v4  ;;  %v1934_v6 = vpop.f32.mrb[85].mxu1  ;;  %1997 = vmatmul.mubr.bf16.gmra.mrb[132].mxu0 %v1028_v3 }
 0x3c4   :  { %v961_v7 = vpop.f32.mrb[86].mxu1  ;;  %2000 = vmatprep.mubr.msk.bf16.mxu0 %vm2179_vm1, %v2178_v0 }
 0x3c5   :  { %v962_v8 = vadd.f32 %v2550_v53, %v961_v7  ;;  %v1935_v9 = vpop.f32.mrb[87].mxu1  ;;  %v1012_v10 = vmax.f32 %v959_v5, 0.0 }
 0x3c7   :  { %v1013_v11 = vmax.f32 %v962_v8, 0.0 }
 0x3c9   :  { %v1029_v12 = vpack.c.bf16 %v1013_v11, %v1012_v10 }
 0x3ca   :  { %v966_v13 = vpop.f32.mrb[88].mxu1 }
 0x3cb   :  { %v967_v14 = vadd.f32 %v2550_v53, %v966_v13  ;;  %v1938_v15 = vpop.f32.mrb[89].mxu1  ;;  %2001 = vmatmul.mubr.bf16.gmra.mrb[136].mxu0 %v1029_v12 }
 0x3cc   :  { %v969_v16 = vpop.f32.mrb[90].mxu1  ;;  %2004 = vmatprep.mubr.msk.bf16.mxu0 %vm2179_vm1, %v2178_v0 }
 0x3cd   :  { %v970_v17 = vadd.f32 %v2550_v53, %v969_v16  ;;  %v1939_v18 = vpop.f32.mrb[91].mxu1  ;;  %v1014_v19 = vmax.f32 %v967_v14, 0.0 }
 0x3cf   :  { %v1015_v20 = vmax.f32 %v970_v17, 0.0 }
 0x3d1   :  { %v1030_v21 = vpack.c.bf16 %v1015_v20, %v1014_v19 }
 0x3d2   :  { %v974_v22 = vpop.f32.mrb[92].mxu1 }
 0x3d3   :  { %v975_v23 = vadd.f32 %v2550_v53, %v974_v22  ;;  %v1942_v24 = vpop.f32.mrb[93].mxu1  ;;  %2005 = vmatmul.mubr.bf16.gmra.mrb[140].mxu0 %v1030_v21 }
 0x3d4   :  { %v977_v25 = vpop.f32.mrb[94].mxu1  ;;  %2008 = vmatprep.mubr.msk.bf16.mxu0 %vm2179_vm1, %v2178_v0 }
 0x3d5   :  { %v978_v26 = vadd.f32 %v2550_v53, %v977_v25  ;;  %v1943_v27 = vpop.f32.mrb[95].mxu1  ;;  %v1016_v28 = vmax.f32 %v975_v23, 0.0 }
 0x3d7   :  { %v1017_v29 = vmax.f32 %v978_v26, 0.0 }
 0x3d9   :  { %v1031_v30 = vpack.c.bf16 %v1017_v29, %v1016_v28 }
 0x3da   :  { %v982_v31 = vpop.f32.mrb[96].mxu1 }
 0x3db   :  { %v983_v32 = vadd.f32 %v2550_v53, %v982_v31  ;;  %v1946_v33 = vpop.f32.mrb[97].mxu1  ;;  %2009 = vmatmul.mubr.bf16.gmra.mrb[144].mxu0 %v1031_v30 }
 0x3dc   :  { %v985_v34 = vpop.f32.mrb[98].mxu1  ;;  %2012 = vmatprep.mubr.msk.bf16.mxu0 %vm2179_vm1, %v2178_v0 }
 0x3dd   :  { %v986_v35 = vadd.f32 %v2550_v53, %v985_v34  ;;  %v1947_v36 = vpop.f32.mrb[99].mxu1  ;;  %v1018_v37 = vmax.f32 %v983_v32, 0.0 }
 0x3df   :  { %v1019_v38 = vmax.f32 %v986_v35, 0.0 }
 0x3e1   :  { %v1032_v39 = vpack.c.bf16 %v1019_v38, %v1018_v37 }
 0x3e2   :  { %v990_v40 = vpop.f32.mrb[100].mxu1 }
 0x3e3   :  { %v991_v42 = vadd.f32 %v2550_v53, %v990_v40  ;;  %2013 = vmatmul.mubr.bf16.gmra.mrb[148].mxu0 %v1032_v39  ;;  %v1950_v43 = vpop.f32.mrb[101].mxu1 }
 0x3e4   :  { %v993_v44 = vpop.f32.mrb[102].mxu1  ;;  %2016 = vmatprep.mubr.msk.bf16.mxu0 %vm2179_vm1, %v2178_v0 }
 0x3e5   :  { %v1020_v45 = vmax.f32 %v991_v42, 0.0  ;;  %v1951_v46 = vpop.f32.mrb[103].mxu1 }
 0x3e7   :  { %v1033_v47 = vpack.c.bf16 %v1020_v45, %v1020_v45 }
 0x3eb   :  { %2017 = vmatmul.mubr.bf16.gmra.mrb[152].mxu0 %v1033_v47 }
 0x3ec   :  { %2036 = vmatprep.mubr.msk.bf16.mxu0 %vm2179_vm1, %v2178_v0 }
 0x45e   :  { %v1138_v53 = vpop.f32.mrb[104].mxu0 }
 0x45f   :  { %v1139_v49 = vadd.f32 %v2615_v48, %v1138_v53  ;;  %v1970_v50 = vpop.f32.mrb[105].mxu0 }
 0x460   :  { %v1141_v54 = vpop.f32.mrb[106].mxu0 }
 0x461   :  { %v1142_v51 = vadd.f32 %v2615_v48, %v1141_v54  ;;  %v1971_v52 = vpop.f32.mrb[107].mxu0  ;;  %v1240_v56 = vmax.f32 %v1139_v49, 0.0 }
 0x463   :  { %v1241_v58 = vmax.f32 %v1142_v51, 0.0 }
 0x465   :  { %v1265_v55 = vpack.c.bf16 %v1241_v58, %v1240_v56 }
 0x466   :  { %v1146_v57 = vpop.f32.mrb[108].mxu0 }
 0x467   :  { %v1147_v59 = vadd.f32 %v2615_v48, %v1146_v57  ;;  %v1974_v60 = vpop.f32.mrb[109].mxu0  ;;  %2037 = vmatmul.mubr.bf16.vlgmr.msra.gmra.mrb[156].mxu0 %v1265_v55 }
 0x468   :  { %v1149_v61 = vpop.f32.mrb[110].mxu0 }
 0x469   :  { %v1150_v62 = vadd.f32 %v2615_v48, %v1149_v61  ;;  %v1975_v63 = vpop.f32.mrb[111].mxu0  ;;  %v1242_v1 = vmax.f32 %v1147_v59, 0.0 }
 0x46b   :  { %v1243_v2 = vmax.f32 %v1150_v62, 0.0 }
 0x46d   :  { %v1266_v3 = vpack.c.bf16 %v1243_v2, %v1242_v1 }
 0x46e   :  { %v1154_v4 = vpop.f32.mrb[112].mxu0 }
 0x46f   :  { %v1155_v5 = vadd.f32 %v2615_v48, %v1154_v4  ;;  %v1978_v6 = vpop.f32.mrb[113].mxu0  ;;  %2041 = vmatmul.mubr.bf16.vlgmr.msra.gmra.mrb[104].mxu1 %v1266_v3 }
 0x470   :  { %v1157_v7 = vpop.f32.mrb[114].mxu0  ;;  %2044 = vmatprep.mubr.msk.bf16.mxu1 %vm2179_vm1, %v2178_v0 }
 0x471   :  { %v1158_v8 = vadd.f32 %v2615_v48, %v1157_v7  ;;  %v1979_v9 = vpop.f32.mrb[115].mxu0  ;;  %v1244_v10 = vmax.f32 %v1155_v5, 0.0 }
 0x473   :  { %v1245_v11 = vmax.f32 %v1158_v8, 0.0 }
 0x475   :  { %v1267_v12 = vpack.c.bf16 %v1245_v11, %v1244_v10 }
 0x476   :  { %v1162_v13 = vpop.f32.mrb[116].mxu0 }
 0x477   :  { %v1163_v14 = vadd.f32 %v2615_v48, %v1162_v13  ;;  %v1982_v15 = vpop.f32.mrb[117].mxu0  ;;  %2045 = vmatmul.mubr.bf16.gmra.mrb[108].mxu1 %v1267_v12 }
 0x478   :  { %v1165_v16 = vpop.f32.mrb[118].mxu0  ;;  %2048 = vmatprep.mubr.msk.bf16.mxu1 %vm2179_vm1, %v2178_v0 }
 0x479   :  { %v1166_v17 = vadd.f32 %v2615_v48, %v1165_v16  ;;  %v1983_v18 = vpop.f32.mrb[119].mxu0  ;;  %v1246_v19 = vmax.f32 %v1163_v14, 0.0 }
 0x47b   :  { %v1247_v20 = vmax.f32 %v1166_v17, 0.0 }
 0x47d   :  { %v1268_v21 = vpack.c.bf16 %v1247_v20, %v1246_v19 }
 0x47e   :  { %v1170_v22 = vpop.f32.mrb[120].mxu0 }
 0x47f   :  { %v1171_v23 = vadd.f32 %v2615_v48, %v1170_v22  ;;  %v1986_v24 = vpop.f32.mrb[121].mxu0  ;;  %2049 = vmatmul.mubr.bf16.gmra.mrb[112].mxu1 %v1268_v21 }
 0x480   :  { %v1173_v25 = vpop.f32.mrb[122].mxu0  ;;  %2052 = vmatprep.mubr.msk.bf16.mxu1 %vm2179_vm1, %v2178_v0 }
 0x481   :  { %v1174_v26 = vadd.f32 %v2615_v48, %v1173_v25  ;;  %v1987_v27 = vpop.f32.mrb[123].mxu0  ;;  %v1248_v28 = vmax.f32 %v1171_v23, 0.0 }
 0x483   :  { %v1249_v29 = vmax.f32 %v1174_v26, 0.0 }
 0x485   :  { %v1269_v30 = vpack.c.bf16 %v1249_v29, %v1248_v28 }
 0x486   :  { %v1178_v31 = vpop.f32.mrb[124].mxu0 }
 0x487   :  { %v1179_v32 = vadd.f32 %v2615_v48, %v1178_v31  ;;  %v1990_v33 = vpop.f32.mrb[125].mxu0  ;;  %2053 = vmatmul.mubr.bf16.gmra.mrb[116].mxu1 %v1269_v30 }
 0x488   :  { %v1181_v34 = vpop.f32.mrb[126].mxu0  ;;  %2056 = vmatprep.mubr.msk.bf16.mxu1 %vm2179_vm1, %v2178_v0 }
 0x489   :  { %v1182_v35 = vadd.f32 %v2615_v48, %v1181_v34  ;;  %v1991_v36 = vpop.f32.mrb[127].mxu0  ;;  %v1250_v37 = vmax.f32 %v1179_v32, 0.0 }
 0x48b   :  { %v1251_v38 = vmax.f32 %v1182_v35, 0.0 }
 0x48d   :  { %v1270_v39 = vpack.c.bf16 %v1251_v38, %v1250_v37 }
 0x48e   :  { %v1186_v40 = vpop.f32.mrb[128].mxu0 }
 0x48f   :  { %v1187_v41 = vadd.f32 %v2615_v48, %v1186_v40  ;;  %v1994_v42 = vpop.f32.mrb[129].mxu0  ;;  %2057 = vmatmul.mubr.bf16.gmra.mrb[120].mxu1 %v1270_v39  ;;  %v2667_v39 = vld [vmem:[%s2797_s3 + $0x5] ss:$0 sm:$0xff] }
 0x490   :  { %v1189_v43 = vpop.f32.mrb[130].mxu0  ;;  %2060 = vmatprep.mubr.msk.bf16.mxu1 %vm2179_vm1, %v2178_v0 }
 0x491   :  { %v1190_v44 = vadd.f32 %v2615_v48, %v1189_v43  ;;  %v1995_v45 = vpop.f32.mrb[131].mxu0  ;;  %v1252_v46 = vmax.f32 %v1187_v41, 0.0 }
 0x493   :  { %v1253_v47 = vmax.f32 %v1190_v44, 0.0 }
 0x495   :  { %v1271_v53 = vpack.c.bf16 %v1253_v47, %v1252_v46 }
 0x496   :  { %v1194_v49 = vpop.f32.mrb[132].mxu0 }
 0x497   :  { %v1195_v50 = vadd.f32 %v2615_v48, %v1194_v49  ;;  %v1998_v54 = vpop.f32.mrb[133].mxu0  ;;  %2061 = vmatmul.mubr.bf16.gmra.mrb[124].mxu1 %v1271_v53 }
 0x498   :  { %v1197_v51 = vpop.f32.mrb[134].mxu0  ;;  %2064 = vmatprep.mubr.msk.bf16.mxu1 %vm2179_vm1, %v2178_v0 }
 0x499   :  { %v1198_v52 = vadd.f32 %v2615_v48, %v1197_v51  ;;  %v1999_v56 = vpop.f32.mrb[135].mxu0  ;;  %v1254_v58 = vmax.f32 %v1195_v50, 0.0 }
 0x49b   :  { %v1255_v55 = vmax.f32 %v1198_v52, 0.0 }
 0x49d   :  { %v1272_v57 = vpack.c.bf16 %v1255_v55, %v1254_v58 }
 0x49e   :  { %v1202_v59 = vpop.f32.mrb[136].mxu0 }
 0x49f   :  { %v1203_v60 = vadd.f32 %v2615_v48, %v1202_v59  ;;  %v2002_v61 = vpop.f32.mrb[137].mxu0  ;;  %2065 = vmatmul.mubr.bf16.gmra.mrb[128].mxu1 %v1272_v57 }
 0x4a0   :  { %v1205_v62 = vpop.f32.mrb[138].mxu0  ;;  %2068 = vmatprep.mubr.msk.bf16.mxu1 %vm2179_vm1, %v2178_v0 }
 0x4a1   :  { %v1206_v63 = vadd.f32 %v2615_v48, %v1205_v62  ;;  %v2003_v1 = vpop.f32.mrb[139].mxu0  ;;  %v1256_v2 = vmax.f32 %v1203_v60, 0.0 }
 0x4a3   :  { %v1257_v3 = vmax.f32 %v1206_v63, 0.0 }
 0x4a5   :  { %v1273_v4 = vpack.c.bf16 %v1257_v3, %v1256_v2 }
 0x4a6   :  { %v1210_v5 = vpop.f32.mrb[140].mxu0 }
 0x4a7   :  { %v1211_v6 = vadd.f32 %v2615_v48, %v1210_v5  ;;  %v2006_v7 = vpop.f32.mrb[141].mxu0  ;;  %2069 = vmatmul.mubr.bf16.gmra.mrb[132].mxu1 %v1273_v4 }
 0x4a8   :  { %v1213_v8 = vpop.f32.mrb[142].mxu0  ;;  %2072 = vmatprep.mubr.msk.bf16.mxu1 %vm2179_vm1, %v2178_v0 }
 0x4a9   :  { %v1214_v9 = vadd.f32 %v2615_v48, %v1213_v8  ;;  %v2007_v10 = vpop.f32.mrb[143].mxu0  ;;  %v1258_v11 = vmax.f32 %v1211_v6, 0.0 }
 0x4ab   :  { %v1259_v12 = vmax.f32 %v1214_v9, 0.0 }
 0x4ad   :  { %v1274_v13 = vpack.c.bf16 %v1259_v12, %v1258_v11 }
 0x4ae   :  { %v1218_v14 = vpop.f32.mrb[144].mxu0 }
 0x4af   :  { %v1219_v15 = vadd.f32 %v2615_v48, %v1218_v14  ;;  %v2010_v16 = vpop.f32.mrb[145].mxu0  ;;  %2073 = vmatmul.mubr.bf16.gmra.mrb[136].mxu1 %v1274_v13 }
 0x4b0   :  { %v1221_v17 = vpop.f32.mrb[146].mxu0  ;;  %2076 = vmatprep.mubr.msk.bf16.mxu1 %vm2179_vm1, %v2178_v0 }
 0x4b1   :  { %v1222_v18 = vadd.f32 %v2615_v48, %v1221_v17  ;;  %v2011_v19 = vpop.f32.mrb[147].mxu0  ;;  %v1260_v20 = vmax.f32 %v1219_v15, 0.0 }
 0x4b3   :  { %v1261_v21 = vmax.f32 %v1222_v18, 0.0 }
 0x4b5   :  { %v1275_v22 = vpack.c.bf16 %v1261_v21, %v1260_v20 }
 0x4b6   :  { %v1226_v23 = vpop.f32.mrb[148].mxu0 }
 0x4b7   :  { %v1227_v24 = vadd.f32 %v2615_v48, %v1226_v23  ;;  %v2014_v25 = vpop.f32.mrb[149].mxu0  ;;  %2077 = vmatmul.mubr.bf16.gmra.mrb[140].mxu1 %v1275_v22 }
 0x4b8   :  { %v1229_v26 = vpop.f32.mrb[150].mxu0  ;;  %2080 = vmatprep.mubr.msk.bf16.mxu1 %vm2179_vm1, %v2178_v0 }
 0x4b9   :  { %v1230_v27 = vadd.f32 %v2615_v48, %v1229_v26  ;;  %v2015_v28 = vpop.f32.mrb[151].mxu0  ;;  %v1262_v29 = vmax.f32 %v1227_v24, 0.0 }
 0x4bb   :  { %v1263_v30 = vmax.f32 %v1230_v27, 0.0 }
 0x4bd   :  { %v1276_v31 = vpack.c.bf16 %v1263_v30, %v1262_v29 }
 0x4be   :  { %v1234_v32 = vpop.f32.mrb[152].mxu0 }
 0x4bf   :  { %v1235_v33 = vadd.f32 %v2615_v48, %v1234_v32  ;;  %v2018_v34 = vpop.f32.mrb[153].mxu0  ;;  %2081 = vmatmul.mubr.bf16.gmra.mrb[144].mxu1 %v1276_v31 }
 0x4c0   :  { %v1237_v35 = vpop.f32.mrb[154].mxu0  ;;  %2084 = vmatprep.mubr.msk.bf16.mxu1 %vm2179_vm1, %v2178_v0 }
 0x4c1   :  { %v1264_v36 = vmax.f32 %v1235_v33, 0.0  ;;  %v2019_v37 = vpop.f32.mrb[155].mxu0 }
 0x4c3   :  { %v1277_v38 = vpack.c.bf16 %v1264_v36, %v1264_v36 }
 0x4c7   :  { %2085 = vmatmul.mubr.bf16.gmra.mrb[148].mxu1 %v1277_v38 }
 0x53a   :  { %v1382_v40 = vpop.f32.mrb[156].mxu0 }
 0x53b   :  { %v1383_v41 = vadd.f32 %v2667_v39, %v1382_v40  ;;  %v2038_v48 = vpop.f32.mrb[157].mxu0 }
 0x53c   :  { %v1385_v42 = vpop.f32.mrb[158].mxu0 }
 0x53d   :  { %1485 = vst.msk [vmem:[%s2798_s4] sm:$0xff] %vm1484_vm4, %v1383_v41  ;;  %v1386_v0 = vadd.f32 %v2667_v39, %v1385_v42  ;;  %v2039_v43 = vpop.f32.mrb[159].mxu0 }
 0x53f   :  { %1486 = vst.msk [vmem:[%s2798_s4 + $0x8] sm:$0xff] %vm1484_vm4, %v1386_v0 }
 0x542   :  { %v1390_v44 = vpop.f32.mrb[104].mxu1 }
 0x543   :  { %v1391_v45 = vadd.f32 %v2667_v39, %v1390_v44  ;;  %v2042_v46 = vpop.f32.mrb[105].mxu1 }
 0x544   :  { %v1393_v47 = vpop.f32.mrb[106].mxu1 }
 0x545   :  { %1487 = vst.msk [vmem:[%s2798_s4 + $0x10] sm:$0xff] %vm1484_vm4, %v1391_v45  ;;  %v1394_v53 = vadd.f32 %v2667_v39, %v1393_v47  ;;  %v2043_v49 = vpop.f32.mrb[107].mxu1 }
 0x547   :  { %1488 = vst.msk [vmem:[%s2798_s4 + $0x18] sm:$0xff] %vm1484_vm4, %v1394_v53 }
 0x54a   :  { %v1398_v50 = vpop.f32.mrb[108].mxu1 }
 0x54b   :  { %v1399_v54 = vadd.f32 %v2667_v39, %v1398_v50  ;;  %v2046_v51 = vpop.f32.mrb[109].mxu1 }
 0x54c   :  { %v1401_v52 = vpop.f32.mrb[110].mxu1 }
 0x54d   :  { %1489 = vst.msk [vmem:[%s2798_s4 + $0x20] sm:$0xff] %vm1484_vm4, %v1399_v54  ;;  %v1402_v56 = vadd.f32 %v2667_v39, %v1401_v52  ;;  %v2047_v58 = vpop.f32.mrb[111].mxu1 }
 0x54f   :  { %1490 = vst.msk [vmem:[%s2798_s4 + $0x28] sm:$0xff] %vm1484_vm4, %v1402_v56 }
 0x552   :  { %v1406_v55 = vpop.f32.mrb[112].mxu1 }
 0x553   :  { %v1407_v57 = vadd.f32 %v2667_v39, %v1406_v55  ;;  %v2050_v59 = vpop.f32.mrb[113].mxu1 }
 0x554   :  { %v1409_v60 = vpop.f32.mrb[114].mxu1 }
 0x555   :  { %1491 = vst.msk [vmem:[%s2798_s4 + $0x30] sm:$0xff] %vm1484_vm4, %v1407_v57  ;;  %v1410_v61 = vadd.f32 %v2667_v39, %v1409_v60  ;;  %v2051_v62 = vpop.f32.mrb[115].mxu1 }
 0x557   :  { %1492 = vst.msk [vmem:[%s2798_s4 + $0x38] sm:$0xff] %vm1484_vm4, %v1410_v61 }
 0x55a   :  { %v1414_v63 = vpop.f32.mrb[116].mxu1 }
 0x55b   :  { %v1415_v1 = vadd.f32 %v2667_v39, %v1414_v63  ;;  %v2054_v2 = vpop.f32.mrb[117].mxu1 }
 0x55c   :  { %v1417_v3 = vpop.f32.mrb[118].mxu1 }
 0x55d   :  { %1493 = vst.msk [vmem:[%s2798_s4 + $0x40] sm:$0xff] %vm1484_vm4, %v1415_v1  ;;  %v1418_v4 = vadd.f32 %v2667_v39, %v1417_v3  ;;  %v2055_v5 = vpop.f32.mrb[119].mxu1 }
 0x55f   :  { %1494 = vst.msk [vmem:[%s2798_s4 + $0x48] sm:$0xff] %vm1484_vm4, %v1418_v4 }
 0x562   :  { %v1422_v6 = vpop.f32.mrb[120].mxu1 }
 0x563   :  { %v1423_v7 = vadd.f32 %v2667_v39, %v1422_v6  ;;  %v2058_v8 = vpop.f32.mrb[121].mxu1 }
 0x564   :  { %v1425_v9 = vpop.f32.mrb[122].mxu1 }
 0x565   :  { %1495 = vst.msk [vmem:[%s2798_s4 + $0x50] sm:$0xff] %vm1484_vm4, %v1423_v7  ;;  %v1426_v10 = vadd.f32 %v2667_v39, %v1425_v9  ;;  %v2059_v11 = vpop.f32.mrb[123].mxu1 }
 0x567   :  { %1496 = vst.msk [vmem:[%s2798_s4 + $0x58] sm:$0xff] %vm1484_vm4, %v1426_v10 }
 0x56a   :  { %v1430_v12 = vpop.f32.mrb[124].mxu1 }
 0x56b   :  { %v1431_v13 = vadd.f32 %v2667_v39, %v1430_v12  ;;  %v2062_v14 = vpop.f32.mrb[125].mxu1 }
 0x56c   :  { %v1433_v15 = vpop.f32.mrb[126].mxu1 }
 0x56d   :  { %1497 = vst.msk [vmem:[%s2798_s4 + $0x60] sm:$0xff] %vm1484_vm4, %v1431_v13  ;;  %v1434_v16 = vadd.f32 %v2667_v39, %v1433_v15  ;;  %v2063_v17 = vpop.f32.mrb[127].mxu1 }
 0x56f   :  { %1498 = vst.msk [vmem:[%s2798_s4 + $0x68] sm:$0xff] %vm1484_vm4, %v1434_v16 }
 0x572   :  { %v1438_v18 = vpop.f32.mrb[128].mxu1 }
 0x573   :  { %v1439_v19 = vadd.f32 %v2667_v39, %v1438_v18  ;;  %v2066_v20 = vpop.f32.mrb[129].mxu1 }
 0x574   :  { %v1441_v21 = vpop.f32.mrb[130].mxu1 }
 0x575   :  { %1499 = vst.msk [vmem:[%s2798_s4 + $0x70] sm:$0xff] %vm1484_vm4, %v1439_v19  ;;  %v1442_v22 = vadd.f32 %v2667_v39, %v1441_v21  ;;  %v2067_v23 = vpop.f32.mrb[131].mxu1 }
 0x577   :  { %1500 = vst.msk [vmem:[%s2798_s4 + $0x78] sm:$0xff] %vm1484_vm4, %v1442_v22 }
 0x57a   :  { %v1446_v24 = vpop.f32.mrb[132].mxu1 }
 0x57b   :  { %v1447_v25 = vadd.f32 %v2667_v39, %v1446_v24  ;;  %v2070_v26 = vpop.f32.mrb[133].mxu1 }
 0x57c   :  { %v1449_v27 = vpop.f32.mrb[134].mxu1 }
 0x57d   :  { %1501 = vst.msk [vmem:[%s2798_s4 + $0x80] sm:$0xff] %vm1484_vm4, %v1447_v25  ;;  %v1450_v28 = vadd.f32 %v2667_v39, %v1449_v27  ;;  %v2071_v29 = vpop.f32.mrb[135].mxu1 }
 0x57f   :  { %1502 = vst.msk [vmem:[%s2798_s4 + $0x88] sm:$0xff] %vm1484_vm4, %v1450_v28 }
 0x582   :  { %v1454_v30 = vpop.f32.mrb[136].mxu1 }
 0x583   :  { %v1455_v31 = vadd.f32 %v2667_v39, %v1454_v30  ;;  %v2074_v32 = vpop.f32.mrb[137].mxu1 }
 0x584   :  { %v1457_v33 = vpop.f32.mrb[138].mxu1 }
 0x585   :  { %1503 = vst.msk [vmem:[%s2798_s4 + $0x90] sm:$0xff] %vm1484_vm4, %v1455_v31  ;;  %v1458_v34 = vadd.f32 %v2667_v39, %v1457_v33  ;;  %v2075_v35 = vpop.f32.mrb[139].mxu1 }
 0x587   :  { %1504 = vst.msk [vmem:[%s2798_s4 + $0x98] sm:$0xff] %vm1484_vm4, %v1458_v34 }
 0x58a   :  { %v1462_v36 = vpop.f32.mrb[140].mxu1 }
 0x58b   :  { %v1463_v37 = vadd.f32 %v2667_v39, %v1462_v36  ;;  %v2078_v38 = vpop.f32.mrb[141].mxu1 }
 0x58c   :  { %v1465_v40 = vpop.f32.mrb[142].mxu1 }
 0x58d   :  { %1505 = vst.msk [vmem:[%s2798_s4 + $0xa0] sm:$0xff] %vm1484_vm4, %v1463_v37  ;;  %v1466_v41 = vadd.f32 %v2667_v39, %v1465_v40  ;;  %v2079_v48 = vpop.f32.mrb[143].mxu1 }
 0x58f   :  { %1506 = vst.msk [vmem:[%s2798_s4 + $0xa8] sm:$0xff] %vm1484_vm4, %v1466_v41 }
 0x592   :  { %v1470_v42 = vpop.f32.mrb[144].mxu1 }
 0x593   :  { %v1471_v0 = vadd.f32 %v2667_v39, %v1470_v42  ;;  %v2082_v43 = vpop.f32.mrb[145].mxu1 }
 0x594   :  { %v1473_v44 = vpop.f32.mrb[146].mxu1 }
 0x595   :  { %1507 = vst.msk [vmem:[%s2798_s4 + $0xb0] sm:$0xff] %vm1484_vm4, %v1471_v0  ;;  %v1474_v45 = vadd.f32 %v2667_v39, %v1473_v44  ;;  %v2083_v46 = vpop.f32.mrb[147].mxu1 }
 0x597   :  { %1508 = vst.msk [vmem:[%s2798_s4 + $0xb8] sm:$0xff] %vm1484_vm4, %v1474_v45 }
 0x59a   :  { %v1478_v47 = vpop.f32.mrb[148].mxu1 }
 0x59b   :  { %v1479_v53 = vadd.f32 %v2667_v39, %v1478_v47  ;;  %v2086_v49 = vpop.f32.mrb[149].mxu1 }
 0x59c   :  { %v1481_v50 = vpop.f32.mrb[150].mxu1 }
 0x59d   :  { %1509 = vst.msk [vmem:[%s2798_s4 + $0xc0] sm:$0xff] %vm1484_vm4, %v1479_v53  ;;  %v2087_v54 = vpop.f32.mrb[151].mxu1 }
 0x59e   :  { %1514 = vsyncpa [#allocation3], 1 }

</bundles_post_ra>
